<compile_context>
chip_gen: v7x
topology: tpu7x:2x2x1
jax: 0.10.0
libtpu: 0.0.40
codegen_flags: <defaults>
</compile_context>

<pallas_src>
import jax
import jax.numpy as jnp
from jax.experimental import pallas as pl
from jax.experimental.pallas import tpu as pltpu

EPS = 1e-5
MOMENTUM = 0.1


def conv_bn_kernel(w_ref, x_ref, gamma_ref, beta_ref, o_ref, mean_ref, var_ref):
    # w_ref:      [Cb, Cin]  bf16   (Cb = Cout / cout_split)
    # x_ref:      [Cin, HW]  f32    (native dtype; cast to bf16 here, hidden under DMA)
    # gamma/beta: [Cb, 1]    f32
    # o_ref:      [Cb, HW]   f32
    # mean/var:   [Cb, 1]    f32    (biased batch stats, for running-stat update)
    x_bf16 = x_ref[...].astype(jnp.bfloat16)
    # 1x1 conv == matmul on the MXU, f32 accumulation.
    y = jnp.dot(w_ref[...], x_bf16, preferred_element_type=jnp.float32)

    # BatchNorm2d (training mode): biased batch stats over the HW (= N*H*W) axis.
    # Two-pass variance (cheap VPU ops on a compute-idle kernel, better numerics).
    m = jnp.float32(y.shape[1])
    mean = jnp.sum(y, axis=1, keepdims=True) / m          # [Cb, 1]
    centered = y - mean
    var = jnp.sum(centered * centered, axis=1, keepdims=True) / m

    scale = gamma_ref[...] * jax.lax.rsqrt(var + EPS)
    o_ref[...] = (centered * scale + beta_ref[...]).astype(o_ref.dtype)
    mean_ref[...] = mean
    var_ref[...] = var


def _cout_split(cout):
    """2 on chips with 2 TensorCores (v7x / v4 megacore), else 1 (v5e/v6e)."""
    try:
        kind = jax.devices()[0].device_kind.lower()
    except Exception:
        return 1
    split = 2 if ("v7" in kind or "v4" in kind) else 1
    if cout % split != 0 or (cout // split) % 8 != 0:
        split = 1
    return split


def prepare_conv_bn_params(w_oihw, gamma, beta):
    """One-time param prep (OUT of the hot path): bf16 weight slab, f32 columns."""
    Cout, Cin = w_oihw.shape[0], w_oihw.shape[1]
    w2d = w_oihw.reshape(Cout, Cin).astype(jnp.bfloat16)
    gamma2d = gamma.reshape(Cout, 1).astype(jnp.float32)
    beta2d = beta.reshape(Cout, 1).astype(jnp.float32)
    return w2d, gamma2d, beta2d


def conv2d_1x1_batchnorm(x_nchw, w2d, gamma2d, beta2d):
    """x_nchw: [N, Cin, H, W]; w2d: [Cout, Cin] bf16; gamma2d/beta2d: [Cout, 1] f32.

    Returns (y_nchw, batch_mean [Cout], batch_var_biased [Cout])."""
    N, Cin, H, W = x_nchw.shape
    Cout = w2d.shape[0]
    HW = N * H * W

    # Channel-major 2D slab. For N == 1 this is a free view (no transpose kernel).
    if N == 1:
        x2d = x_nchw.reshape(Cin, HW)
    else:
        x2d = jnp.transpose(x_nchw, (1, 0, 2, 3)).reshape(Cin, HW)
    # NOTE: no per-call dtype converts here — X stays native, W already bf16.

    split = _cout_split(Cout)
    Cb = Cout // split

    cost = pl.CostEstimate(
        flops=2 * Cout * Cin * HW,
        transcendentals=Cout,
        bytes_accessed=int(
            x2d.size * x2d.dtype.itemsize      # activations
            + w2d.size * 2                     # bf16 weights
            + Cout * 4 * 2                     # gamma + beta
            + Cout * HW * 4                    # output
            + Cout * 4 * 2                     # mean + var
        ),
    )

    out2d, mean, var = pl.pallas_call(
        conv_bn_kernel,
        out_shape=(
            jax.ShapeDtypeStruct((Cout, HW), x_nchw.dtype),
            jax.ShapeDtypeStruct((Cout, 1), jnp.float32),
            jax.ShapeDtypeStruct((Cout, 1), jnp.float32),
        ),
        grid=(split,),
        in_specs=[
            pl.BlockSpec((Cb, Cin), lambda i: (i, 0)),   # weight slice
            pl.BlockSpec((Cin, HW), lambda i: (0, 0)),   # activations (same block each step)
            pl.BlockSpec((Cb, 1), lambda i: (i, 0)),     # gamma slice
            pl.BlockSpec((Cb, 1), lambda i: (i, 0)),     # beta slice
        ],
        out_specs=(
            pl.BlockSpec((Cb, HW), lambda i: (i, 0)),
            pl.BlockSpec((Cb, 1), lambda i: (i, 0)),
            pl.BlockSpec((Cb, 1), lambda i: (i, 0)),
        ),
        compiler_params=pltpu.CompilerParams(
            dimension_semantics=("parallel",),
        ),
        cost_estimate=cost,
    )(w2d, x2d, gamma2d, beta2d)

    # [Cout, N*H*W] -> NCHW (free reshape for N == 1).
    if N == 1:
        y = out2d.reshape(N, Cout, H, W)
    else:
        y = jnp.transpose(out2d.reshape(Cout, N, H, W), (1, 0, 2, 3))
    return y, mean.reshape(Cout), var.reshape(Cout)


def update_running_stats(running_mean, running_var, batch_mean, batch_var_biased,
                         num_elems, momentum=MOMENTUM):
    """PyTorch BatchNorm2d training-mode side effect (unbiased var for running_var)."""
    unbiased = batch_var_biased * (num_elems / max(num_elems - 1.0, 1.0))
    new_mean = (1.0 - momentum) * running_mean + momentum * batch_mean
    new_var = (1.0 - momentum) * running_var + momentum * unbiased
    return new_mean, new_var


def reference(x_nchw, w_oihw, gamma, beta):
    # Pure f32 reference matching PyTorch Conv2d(1x1, no bias) + BatchNorm2d
    # (training-mode batch statistics, biased variance for normalization).
    N, Cin, H, W = x_nchw.shape
    Cout = w_oihw.shape[0]
    x2d = jnp.transpose(x_nchw, (0, 2, 3, 1)).reshape(-1, Cin).astype(jnp.float32)
    w2d = jnp.transpose(w_oihw.reshape(Cout, Cin), (1, 0)).astype(jnp.float32)
    y = x2d @ w2d
    mean = y.mean(axis=0, keepdims=True)
    var = ((y - mean) ** 2).mean(axis=0, keepdims=True)
    y = (y - mean) / jnp.sqrt(var + EPS) * gamma.reshape(1, -1) + beta.reshape(1, -1)
    out = jnp.transpose(y.reshape(N, H, W, Cout), (0, 3, 1, 2)).astype(x_nchw.dtype)
    return out, mean.reshape(Cout), var.reshape(Cout)


if __name__ == "__main__":
    # Shapes implied by the module: input [1, 1488, 7, 7], conv 1488 -> 192.
    N, Cin, H, W, Cout = 1, 1488, 7, 7, 192

    key = jax.random.PRNGKey(0)
    kx, kw, kg, kb = jax.random.split(key, 4)

    x = jax.random.normal(kx, (N, Cin, H, W), dtype=jnp.float32)
    # Deterministic synthetic parameters (no checkpoint loading).
    w = jax.random.normal(kw, (Cout, Cin, 1, 1), dtype=jnp.float32) * 0.02
    gamma = 1.0 + 0.1 * jax.random.normal(kg, (Cout,), dtype=jnp.float32)
    beta = 0.1 * jax.random.normal(kb, (Cout,), dtype=jnp.float32)
    running_mean = jnp.zeros((Cout,), jnp.float32)
    running_var = jnp.ones((Cout,), jnp.float32)

    # One-time param prep (weight bf16 cast happens here, NOT per call).
    w2d, gamma2d, beta2d = prepare_conv_bn_params(w, gamma, beta)

    out, bmean, bvar = conv2d_1x1_batchnorm(x, w2d, gamma2d, beta2d)
    out = jax.block_until_ready(out)

    # BatchNorm running-stat update (training-mode side effect), from kernel stats.
    new_rm, new_rv = update_running_stats(running_mean, running_var, bmean, bvar,
                                          float(N * H * W))
    jax.block_until_ready((new_rm, new_rv))

    ref_out, ref_mean, ref_var = reference(x, w, gamma, beta)
    assert out.shape == (N, Cout, H, W)
    # Tolerance accounts for bf16 MXU inputs (f32 accumulation) vs the f32 reference.
    assert jnp.allclose(out, ref_out, atol=3e-2, rtol=3e-2), float(
        jnp.max(jnp.abs(out - ref_out))
    )
    assert jnp.allclose(bmean, ref_mean, atol=3e-2, rtol=3e-2)
    assert jnp.allclose(bvar, ref_var, atol=3e-2, rtol=3e-2)

    print("KERNEL_OK")
</pallas_src>

<mosaic_0001>
module attributes {stable_mosaic.version = 11 : i64} {
  func.func @conv_bn_kernel(%arg0: i32, %arg1: memref<192x1488xbf16, #tpu.memory_space<vmem>>, %arg2: memref<1488x49xf32, #tpu.memory_space<vmem>>, %arg3: memref<192x1xf32, #tpu.memory_space<vmem>>, %arg4: memref<192x1xf32, #tpu.memory_space<vmem>>, %arg5: memref<192x49xf32, #tpu.memory_space<vmem>>, %arg6: memref<192x1xf32, #tpu.memory_space<vmem>>, %arg7: memref<192x1xf32, #tpu.memory_space<vmem>>) attributes {dimension_semantics = [#tpu.dimension_semantics<parallel>], iteration_bounds = array<i64: 1>, scalar_prefetch = 0 : i64, scratch_operands = 0 : i64, tpu.core_type = #tpu.core_type<tc>, window_params = [{transform_indices = @transform_0, window_bounds = array<i64: 192, 1488>}, {pipeline_mode = #tpu.pipeline_mode<synchronous>, transform_indices = @transform_1, window_bounds = array<i64: 1488, 49>}, {transform_indices = @transform_2, window_bounds = array<i64: 192, 1>}, {transform_indices = @transform_3, window_bounds = array<i64: 192, 1>}, {transform_indices = @transform_4, window_bounds = array<i64: 192, 49>}, {transform_indices = @transform_5, window_bounds = array<i64: 192, 1>}, {transform_indices = @transform_6, window_bounds = array<i64: 192, 1>}]} {
    %c0 = arith.constant 0 : index
    %c0_0 = arith.constant 0 : index
    %0 = vector.load %arg2[%c0, %c0_0] : memref<1488x49xf32, #tpu.memory_space<vmem>>, vector<1488x49xf32>
    %1 = arith.truncf %0 : vector<1488x49xf32> to vector<1488x49xbf16>
    %c0_1 = arith.constant 0 : index
    %c0_2 = arith.constant 0 : index
    %2 = vector.load %arg1[%c0_1, %c0_2] : memref<192x1488xbf16, #tpu.memory_space<vmem>>, vector<192x1488xbf16>
    %cst = arith.constant dense<0.000000e+00> : vector<192x49xf32>
    %3 = tpu.matmul %2, %1, %cst {dimension_numbers = #tpu.dot_dimension_numbers<[1], [0], [0], [1], [0, 0, 1, 1], [], []>} : vector<192x1488xbf16>, vector<1488x49xbf16>, vector<192x49xf32> -> vector<192x49xf32>
    %cst_3 = arith.constant dense<0.000000e+00> : vector<192xf32>
    %4 = vector.multi_reduction <add>, %3, %cst_3 [1] : vector<192x49xf32> to vector<192xf32>
    %5 = vector.shape_cast %4 : vector<192xf32> to vector<192x1xf32>
    %cst_4 = arith.constant 4.900000e+01 : f32
    %6 = vector.broadcast %cst_4 : f32 to vector<192x1xf32>
    %7 = arith.divf %5, %6 : vector<192x1xf32>
    %8 = vector.broadcast %7 : vector<192x1xf32> to vector<192x49xf32>
    %9 = arith.subf %3, %8 : vector<192x49xf32>
    %10 = arith.mulf %9, %9 : vector<192x49xf32>
    %cst_5 = arith.constant dense<0.000000e+00> : vector<192xf32>
    %11 = vector.multi_reduction <add>, %10, %cst_5 [1] : vector<192x49xf32> to vector<192xf32>
    %12 = vector.shape_cast %11 : vector<192xf32> to vector<192x1xf32>
    %cst_6 = arith.constant 4.900000e+01 : f32
    %13 = vector.broadcast %cst_6 : f32 to vector<192x1xf32>
    %14 = arith.divf %12, %13 : vector<192x1xf32>
    %c0_7 = arith.constant 0 : index
    %c0_8 = arith.constant 0 : index
    %15 = vector.load %arg3[%c0_7, %c0_8] : memref<192x1xf32, #tpu.memory_space<vmem>>, vector<192x1xf32>
    %cst_9 = arith.constant 9.99999974E-6 : f32
    %16 = vector.broadcast %cst_9 : f32 to vector<192x1xf32>
    %17 = arith.addf %14, %16 : vector<192x1xf32>
    %18 = math.rsqrt %17 : vector<192x1xf32>
    %19 = arith.mulf %15, %18 : vector<192x1xf32>
    %20 = vector.broadcast %19 : vector<192x1xf32> to vector<192x49xf32>
    %21 = arith.mulf %9, %20 : vector<192x49xf32>
    %c0_10 = arith.constant 0 : index
    %c0_11 = arith.constant 0 : index
    %22 = vector.load %arg4[%c0_10, %c0_11] : memref<192x1xf32, #tpu.memory_space<vmem>>, vector<192x1xf32>
    %23 = vector.broadcast %22 : vector<192x1xf32> to vector<192x49xf32>
    %24 = arith.addf %21, %23 : vector<192x49xf32>
    %c0_12 = arith.constant 0 : index
    %c0_13 = arith.constant 0 : index
    %25 = vector.load %arg5[%c0_12, %c0_13] : memref<192x49xf32, #tpu.memory_space<vmem>>, vector<192x49xf32>
    tpu.vector_store %arg5[%c0_12, %c0_13], %24 {strides = array<i32>} : memref<192x49xf32, #tpu.memory_space<vmem>>, vector<192x49xf32>,
    %c0_14 = arith.constant 0 : index
    %c0_15 = arith.constant 0 : index
    %26 = vector.load %arg6[%c0_14, %c0_15] : memref<192x1xf32, #tpu.memory_space<vmem>>, vector<192x1xf32>
    tpu.vector_store %arg6[%c0_14, %c0_15], %7 {strides = array<i32>} : memref<192x1xf32, #tpu.memory_space<vmem>>, vector<192x1xf32>,
    %c0_16 = arith.constant 0 : index
    %c0_17 = arith.constant 0 : index
    %27 = vector.load %arg7[%c0_16, %c0_17] : memref<192x1xf32, #tpu.memory_space<vmem>>, vector<192x1xf32>
    tpu.vector_store %arg7[%c0_16, %c0_17], %14 {strides = array<i32>} : memref<192x1xf32, #tpu.memory_space<vmem>>, vector<192x1xf32>,
    return
  }
  func.func @transform_0(%arg0: i32) -> (i32, i32) {
    %c0_i32 = arith.constant 0 : i32
    %c0_i32_0 = arith.constant 0 : i32
    return %arg0, %c0_i32 : i32, i32
  }
  func.func @transform_1(%arg0: i32) -> (i32, i32) {
    %c0_i32 = arith.constant 0 : i32
    %c0_i32_0 = arith.constant 0 : i32
    %c0_i32_1 = arith.constant 0 : i32
    return %c0_i32, %c0_i32_0 : i32, i32
  }
  func.func @transform_2(%arg0: i32) -> (i32, i32) {
    %c0_i32 = arith.constant 0 : i32
    %c0_i32_0 = arith.constant 0 : i32
    return %arg0, %c0_i32 : i32, i32
  }
  func.func @transform_3(%arg0: i32) -> (i32, i32) {
    %c0_i32 = arith.constant 0 : i32
    %c0_i32_0 = arith.constant 0 : i32
    return %arg0, %c0_i32 : i32, i32
  }
  func.func @transform_4(%arg0: i32) -> (i32, i32) {
    %c0_i32 = arith.constant 0 : i32
    %c0_i32_0 = arith.constant 0 : i32
    return %arg0, %c0_i32 : i32, i32
  }
  func.func @transform_5(%arg0: i32) -> (i32, i32) {
    %c0_i32 = arith.constant 0 : i32
    %c0_i32_0 = arith.constant 0 : i32
    return %arg0, %c0_i32 : i32, i32
  }
  func.func @transform_6(%arg0: i32) -> (i32, i32) {
    %c0_i32 = arith.constant 0 : i32
    %c0_i32_0 = arith.constant 0 : i32
    return %arg0, %c0_i32 : i32, i32
  }
}

</mosaic_0001>

<bundles_post_ra>
// kernel: tpu_custom_call.1
= control target key start
LH: loop header
LB: loop body
LE: loop exit
PB: predicated region body
PF: predicated region fallthrough
CT: control target
= control target key end

     0   :  { %v3561_v25 = vmov 0   ;;  %vm1152_vm0 = vcmask 654336   ;;  %vm1963_vm1 = vcmask 400384   ;;  %vm2637_vm2 = vcmask 7168   ;;  %s5520_s1 = inlined_call_operand.vmem [shape: f32[1488,49], index: 1, kind: input, shape index: {}]   ;;  %s5521_s0 = inlined_call_operand.vmem [shape: bf16[192,1488], index: 0, kind: input, shape index: {}]   ;;  %s5522_s3 = inlined_call_operand.vmem [shape: f32[192,1], index: 3, kind: input, shape index: {}]   ;;  %s5523_s5 = inlined_call_operand.vmem [shape: f32[192,1], index: 5, kind: output, shape index: {1}]   ;;  %s5524_s6 = inlined_call_operand.vmem [shape: f32[192,1], index: 6, kind: output, shape index: {2}]   ;;  %s5525_s2 = inlined_call_operand.vmem [shape: f32[192,1], index: 2, kind: input, shape index: {}]   ;;  %s5526_s4 = inlined_call_operand.vmem [shape: f32[192,49], index: 4, kind: output, shape index: {0}]  }
   0x1   :  { %v37_v0 = vld [vmem:[%s5520_s1 + $0x80] sm:$0xff]  ;;  %v38_v1 = vld [vmem:[%s5520_s1 + $0x88] sm:$0xff]  ;;  %v39_v11 = vld [vmem:[%s5520_s1 + $0x90] sm:$0xff]  ;;  %3295 = vset.pattern.permute.xlu1 %v3561_v25  ;;  %3296 = vset.pattern.permute.xlu0 %v3561_v25 }
   0x2   :  { %v69_v2 = vld [vmem:[%s5520_s1 + $0x180] sm:$0xff]  ;;  %v215_v3 = vpack.c.bf16 %v38_v1, %v37_v0  ;;  %v70_v4 = vld [vmem:[%s5520_s1 + $0x188] sm:$0xff]  ;;  %v40_v13 = vld [vmem:[%s5520_s1 + $0x98] sm:$0xff] }
   0x3   :  { %v21_v5 = vld [vmem:[%s5520_s1] sm:$0xff]  ;;  %v22_v6 = vld [vmem:[%s5520_s1 + $0x8] sm:$0xff]  ;;  %v231_v7 = vpack.c.bf16 %v70_v4, %v69_v2  ;;  %v71_v14 = vld [vmem:[%s5520_s1 + $0x190] sm:$0xff]  ;;  %v216_v16 = vpack.c.bf16 %v40_v13, %v39_v11 }
   0x4   :  { %v207_v8 = vpack.c.bf16 %v22_v6, %v21_v5  ;;  %v53_v9 = vld [vmem:[%s5520_s1 + $0x100] sm:$0xff]  ;;  %v54_v10 = vld [vmem:[%s5520_s1 + $0x108] sm:$0xff]  ;;  %2854 = vmatprep.subr.bf16.mxu0 %v215_v3  ;;  %v72_v15 = vld [vmem:[%s5520_s1 + $0x198] sm:$0xff] }
   0x5   :  { %v223_v12 = vpack.c.bf16 %v54_v10, %v53_v9  ;;  %2942 = vmatprep.subr.bf16.mxu1 %v231_v7  ;;  %v232_v17 = vpack.c.bf16 %v72_v15, %v71_v14  ;;  %v23_v18 = vld [vmem:[%s5520_s1 + $0x10] sm:$0xff]  ;;  %v24_v19 = vld [vmem:[%s5520_s1 + $0x18] sm:$0xff]  ;;  %v41_v23 = vld [vmem:[%s5520_s1 + $0xa0] sm:$0xff] }
   0x6   :  { %2855 = vmatpush3.bf16.msra.mxu0 %v207_v8  ;;  %v55_v20 = vld [vmem:[%s5520_s1 + $0x110] sm:$0xff]  ;;  %v208_v21 = vpack.c.bf16 %v24_v19, %v23_v18  ;;  %v56_v22 = vld [vmem:[%s5520_s1 + $0x118] sm:$0xff]  ;;  %v42_v24 = vld [vmem:[%s5520_s1 + $0xa8] sm:$0xff] }
   0x7   :  { %2943 = vmatpush3.bf16.msra.mxu1 %v223_v12  ;;  %2856 = vmatprep.subr.bf16.mxu0 %v216_v16  ;;  %v224_v26 = vpack.c.bf16 %v56_v22, %v55_v20  ;;  %v217_v27 = vpack.c.bf16 %v42_v24, %v41_v23  ;;  %v73_v28 = vld [vmem:[%s5520_s1 + $0x1a0] sm:$0xff]  ;;  %v74_v29 = vld [vmem:[%s5520_s1 + $0x1a8] sm:$0xff]  ;;  %v43_v36 = vld [vmem:[%s5520_s1 + $0xb0] sm:$0xff] }
   0x8   :  { %2944 = vmatprep.subr.bf16.mxu1 %v232_v17  ;;  %v25_v30 = vld [vmem:[%s5520_s1 + $0x20] sm:$0xff]  ;;  %v233_v31 = vpack.c.bf16 %v74_v29, %v73_v28  ;;  %v26_v32 = vld [vmem:[%s5520_s1 + $0x28] sm:$0xff]  ;;  %v44_v37 = vld [vmem:[%s5520_s1 + $0xb8] sm:$0xff] }
   0x9   :  { %v57_v33 = vld [vmem:[%s5520_s1 + $0x120] sm:$0xff]  ;;  %v58_v34 = vld [vmem:[%s5520_s1 + $0x128] sm:$0xff]  ;;  %v209_v35 = vpack.c.bf16 %v26_v32, %v25_v30  ;;  %v75_v38 = vld [vmem:[%s5520_s1 + $0x1b0] sm:$0xff]  ;;  %v218_v40 = vpack.c.bf16 %v44_v37, %v43_v36 }
   0xa   :  { %2857 = vmatpush3.bf16.msra.mxu0 %v208_v21  ;;  %v225_v39 = vpack.c.bf16 %v58_v34, %v57_v33  ;;  %v76_v41 = vld [vmem:[%s5520_s1 + $0x1b8] sm:$0xff]  ;;  %v27_v42 = vld [vmem:[%s5520_s1 + $0x30] sm:$0xff]  ;;  %v45_v47 = vld [vmem:[%s5520_s1 + $0xc0] sm:$0xff] }
   0xb   :  { %2945 = vmatpush3.bf16.msra.mxu1 %v224_v26  ;;  %2858 = vmatprep.subr.bf16.mxu0 %v217_v27  ;;  %v28_v43 = vld [vmem:[%s5520_s1 + $0x38] sm:$0xff]  ;;  %v234_v44 = vpack.c.bf16 %v76_v41, %v75_v38  ;;  %v59_v45 = vld [vmem:[%s5520_s1 + $0x130] sm:$0xff]  ;;  %v46_v48 = vld [vmem:[%s5520_s1 + $0xc8] sm:$0xff] }
   0xc   :  { %2946 = vmatprep.subr.bf16.mxu1 %v233_v31  ;;  %v60_v46 = vld [vmem:[%s5520_s1 + $0x138] sm:$0xff]  ;;  %v77_v49 = vld [vmem:[%s5520_s1 + $0x1c0] sm:$0xff]  ;;  %v78_v50 = vld [vmem:[%s5520_s1 + $0x1c8] sm:$0xff]  ;;  %v210_v51 = vpack.c.bf16 %v28_v43, %v27_v42  ;;  %v219_v53 = vpack.c.bf16 %v46_v48, %v45_v47 }
   0xd   :  { %v226_v52 = vpack.c.bf16 %v60_v46, %v59_v45  ;;  %v29_v54 = vld [vmem:[%s5520_s1 + $0x40] sm:$0xff]  ;;  %v30_v55 = vld [vmem:[%s5520_s1 + $0x48] sm:$0xff]  ;;  %v235_v57 = vpack.c.bf16 %v78_v50, %v77_v49  ;;  %v47_v59 = vld [vmem:[%s5520_s1 + $0xd0] sm:$0xff] }
   0xe   :  { %2859 = vmatpush3.bf16.msra.mxu0 %v209_v35  ;;  %v61_v56 = vld [vmem:[%s5520_s1 + $0x140] sm:$0xff]  ;;  %v62_v58 = vld [vmem:[%s5520_s1 + $0x148] sm:$0xff]  ;;  %v48_v60 = vld [vmem:[%s5520_s1 + $0xd8] sm:$0xff]  ;;  %v211_v63 = vpack.c.bf16 %v30_v55, %v29_v54 }
   0xf   :  { %2947 = vmatpush3.bf16.msra.mxu1 %v225_v39  ;;  %2860 = vmatprep.subr.bf16.mxu0 %v218_v40  ;;  %v79_v61 = vld [vmem:[%s5520_s1 + $0x1d0] sm:$0xff]  ;;  %v80_v62 = vld [vmem:[%s5520_s1 + $0x1d8] sm:$0xff]  ;;  %v227_v1 = vpack.c.bf16 %v62_v58, %v61_v56  ;;  %v220_v2 = vpack.c.bf16 %v48_v60, %v47_v59  ;;  %v49_v7 = vld [vmem:[%s5520_s1 + $0xe0] sm:$0xff] }
  0x10   :  { %2948 = vmatprep.subr.bf16.mxu1 %v234_v44  ;;  %v31_v0 = vld [vmem:[%s5520_s1 + $0x50] sm:$0xff]  ;;  %v32_v3 = vld [vmem:[%s5520_s1 + $0x58] sm:$0xff]  ;;  %v236_v6 = vpack.c.bf16 %v80_v62, %v79_v61  ;;  %v50_v8 = vld [vmem:[%s5520_s1 + $0xe8] sm:$0xff] }
  0x11   :  { %v63_v4 = vld [vmem:[%s5520_s1 + $0x150] sm:$0xff]  ;;  %v64_v5 = vld [vmem:[%s5520_s1 + $0x158] sm:$0xff]  ;;  %v81_v9 = vld [vmem:[%s5520_s1 + $0x1e0] sm:$0xff]  ;;  %v212_v13 = vpack.c.bf16 %v32_v3, %v31_v0  ;;  %v221_v18 = vpack.c.bf16 %v50_v8, %v49_v7 }
  0x12   :  { %2861 = vmatpush3.bf16.msra.mxu0 %v210_v51  ;;  %v82_v10 = vld [vmem:[%s5520_s1 + $0x1e8] sm:$0xff]  ;;  %v33_v11 = vld [vmem:[%s5520_s1 + $0x60] sm:$0xff]  ;;  %v51_v16 = vld [vmem:[%s5520_s1 + $0xf0] sm:$0xff]  ;;  %v228_v17 = vpack.c.bf16 %v64_v5, %v63_v4 }
  0x13   :  { %2949 = vmatpush3.bf16.msra.mxu1 %v226_v52  ;;  %2862 = vmatprep.subr.bf16.mxu0 %v219_v53  ;;  %v34_v12 = vld [vmem:[%s5520_s1 + $0x68] sm:$0xff]  ;;  %v65_v14 = vld [vmem:[%s5520_s1 + $0x160] sm:$0xff]  ;;  %v52_v19 = vld [vmem:[%s5520_s1 + $0xf8] sm:$0xff]  ;;  %v237_v20 = vpack.c.bf16 %v82_v10, %v81_v9 }
  0x14   :  { %2950 = vmatprep.subr.bf16.mxu1 %v235_v57  ;;  %v66_v15 = vld [vmem:[%s5520_s1 + $0x168] sm:$0xff]  ;;  %v83_v21 = vld [vmem:[%s5520_s1 + $0x1f0] sm:$0xff]  ;;  %v84_v23 = vld [vmem:[%s5520_s1 + $0x1f8] sm:$0xff]  ;;  %v213_v26 = vpack.c.bf16 %v34_v12, %v33_v11  ;;  %v222_v30 = vpack.c.bf16 %v52_v19, %v51_v16 }
  0x15   :  { %v3299_v22 = vld [vmem:[%s5521_s0 + $0x4] ss:$48 sps:$4 sm:$0xff]   ;;  %v3302_v24 = vld [vmem:[%s5521_s0 + $0xc] ss:$48 sps:$4 sm:$0xff]   ;;  %v229_v29 = vpack.c.bf16 %v66_v15, %v65_v14  ;;  %v238_v34 = vpack.c.bf16 %v84_v23, %v83_v21  ;;  %v3297_v40 = vld [vmem:[%s5521_s0] ss:$48 sps:$4 sm:$0xff]  }
  0x16   :  { %2863 = vmatpush3.bf16.msra.mxu0 %v211_v63  ;;  %v35_v27 = vld [vmem:[%s5520_s1 + $0x70] sm:$0xff]  ;;  %v36_v28 = vld [vmem:[%s5520_s1 + $0x78] sm:$0xff]  ;;  %1221 = vmatprep.mubr.bf16.mxu0 %v3299_v22  ;;  %v101_v33 = vld [vmem:[%s5520_s1 + $0x280] sm:$0xff] }
  0x17   :  { %2951 = vmatpush3.bf16.msra.mxu1 %v227_v1  ;;  %2864 = vmatprep.subr.bf16.mxu0 %v220_v2  ;;  %v67_v31 = vld [vmem:[%s5520_s1 + $0x170] sm:$0xff]  ;;  %v68_v32 = vld [vmem:[%s5520_s1 + $0x178] sm:$0xff]  ;;  %v102_v35 = vld [vmem:[%s5520_s1 + $0x288] sm:$0xff]  ;;  %v214_v38 = vpack.c.bf16 %v36_v28, %v35_v27 }
  0x18   :  { %2952 = vmatprep.subr.bf16.mxu1 %v236_v6  ;;  %1350 = vmatprep.mubr.bf16.mxu1 %v3302_v24  ;;  %v133_v36 = vld [vmem:[%s5520_s1 + $0x380] sm:$0xff]  ;;  %v134_v37 = vld [vmem:[%s5520_s1 + $0x388] sm:$0xff]  ;;  %v230_v39 = vpack.c.bf16 %v68_v32, %v67_v31  ;;  %v247_v41 = vpack.c.bf16 %v102_v35, %v101_v33  ;;  %v103_v48 = vld [vmem:[%s5520_s1 + $0x290] sm:$0xff] }
  0x19   :  { %v85_v42 = vld [vmem:[%s5520_s1 + $0x200] sm:$0xff]  ;;  %v86_v43 = vld [vmem:[%s5520_s1 + $0x208] sm:$0xff]  ;;  %v263_v46 = vpack.c.bf16 %v134_v37, %v133_v36  ;;  %v104_v50 = vld [vmem:[%s5520_s1 + $0x298] sm:$0xff] }
  0x1a   :  { %2865 = vmatpush3.bf16.msra.mxu0 %v212_v13  ;;  %v117_v44 = vld [vmem:[%s5520_s1 + $0x300] sm:$0xff]  ;;  %v3300_v45 = vld [vmem:[%s5521_s0 + $0x8] ss:$48 sps:$4 sm:$0xff]   ;;  %v239_v51 = vpack.c.bf16 %v86_v43, %v85_v42  ;;  %v3305_v52 = vld [vmem:[%s5521_s0 + $0x6c] ss:$48 sps:$4 sm:$0xff]   ;;  %v248_v58 = vpack.c.bf16 %v104_v50, %v103_v48 }
  0x1b   :  { %2953 = vmatpush3.bf16.msra.mxu1 %v228_v17  ;;  %2866 = vmatprep.subr.bf16.mxu0 %v221_v18  ;;  %v118_v47 = vld [vmem:[%s5520_s1 + $0x308] sm:$0xff]  ;;  %v3303_v49 = vld [vmem:[%s5521_s0 + $0x64] ss:$48 sps:$4 sm:$0xff]   ;;  %v88_v55 = vld [vmem:[%s5520_s1 + $0x218] sm:$0xff] }
  0x1c   :  { %2954 = vmatprep.subr.bf16.mxu1 %v237_v20  ;;  %v87_v53 = vld [vmem:[%s5520_s1 + $0x210] sm:$0xff]  ;;  %v255_v54 = vpack.c.bf16 %v118_v47, %v117_v44  ;;  %v136_v57 = vld [vmem:[%s5520_s1 + $0x398] sm:$0xff]  ;;  %v105_v1 = vld [vmem:[%s5520_s1 + $0x2a0] sm:$0xff] }
  0x1d   :  { %v135_v56 = vld [vmem:[%s5520_s1 + $0x390] sm:$0xff]  ;;  %v120_v60 = vld [vmem:[%s5520_s1 + $0x318] sm:$0xff]  ;;  %v240_v62 = vpack.c.bf16 %v88_v55, %v87_v53  ;;  %v106_v2 = vld [vmem:[%s5520_s1 + $0x2a8] sm:$0xff] }
  0x1e   :  { %2867 = vmatpush3.bf16.msra.mxu0 %v213_v26  ;;  %v119_v59 = vld [vmem:[%s5520_s1 + $0x310] sm:$0xff]  ;;  %v264_v61 = vpack.c.bf16 %v136_v57, %v135_v56  ;;  %v3308_v3 = vld [vmem:[%s5521_s0 + $0x68] ss:$48 sps:$4 sm:$0xff]   ;;  %v249_v4 = vpack.c.bf16 %v106_v2, %v105_v1  ;;  %v89_v5 = vld [vmem:[%s5520_s1 + $0x220] sm:$0xff] }
  0x1f   :  { %2955 = vmatpush3.bf16.msra.mxu1 %v229_v29  ;;  %2868 = vmatprep.subr.bf16.mxu0 %v222_v30  ;;  %v3307_v63 = vld [vmem:[%s5521_s0 + $0x60] ss:$48 sps:$4 sm:$0xff]   ;;  %v256_v0 = vpack.c.bf16 %v120_v60, %v119_v59  ;;  %v90_v6 = vld [vmem:[%s5520_s1 + $0x228] sm:$0xff]  ;;  %v3309_v11 = vld [vmem:[%s5521_s0 + $0xc4] ss:$48 sps:$4 sm:$0xff]  }
  0x20   :  { %2956 = vmatprep.subr.bf16.mxu1 %v238_v34  ;;  %v137_v7 = vld [vmem:[%s5520_s1 + $0x3a0] sm:$0xff]  ;;  %v138_v8 = vld [vmem:[%s5520_s1 + $0x3a8] sm:$0xff]  ;;  %v241_v14 = vpack.c.bf16 %v90_v6, %v89_v5  ;;  %v107_v16 = vld [vmem:[%s5520_s1 + $0x2b0] sm:$0xff] }
  0x21   :  { %v121_v9 = vld [vmem:[%s5520_s1 + $0x320] sm:$0xff]  ;;  %v122_v10 = vld [vmem:[%s5520_s1 + $0x328] sm:$0xff]  ;;  %v265_v12 = vpack.c.bf16 %v138_v8, %v137_v7  ;;  %v108_v17 = vld [vmem:[%s5520_s1 + $0x2b8] sm:$0xff] }
  0x22   :  { %2869 = vmatpush3.bf16.msra.mxu0 %v214_v38  ;;  %v3311_v13 = vld [vmem:[%s5521_s0 + $0xcc] ss:$48 sps:$4 sm:$0xff]   ;;  %v257_v15 = vpack.c.bf16 %v122_v10, %v121_v9  ;;  %v91_v18 = vld [vmem:[%s5520_s1 + $0x230] sm:$0xff]  ;;  %v250_v20 = vpack.c.bf16 %v108_v17, %v107_v16  ;;  %v3314_v23 = vld [vmem:[%s5521_s0 + $0xc8] ss:$48 sps:$4 sm:$0xff]  }
  0x23   :  { %2957 = vmatpush3.bf16.msra.mxu1 %v230_v39  ;;  %3030 = vmatprep.subr.bf16.mxu0 %v247_v41  ;;  %v92_v19 = vld [vmem:[%s5520_s1 + $0x238] sm:$0xff]  ;;  %v3313_v22 = vld [vmem:[%s5521_s0 + $0xc0] ss:$48 sps:$4 sm:$0xff]   ;;  %v3315_v29 = vld [vmem:[%s5521_s0 + $0x124] ss:$48 sps:$4 sm:$0xff]  }
  0x24   :  { %3118 = vmatprep.subr.bf16.mxu1 %v263_v46  ;;  %v242_v21 = vpack.c.bf16 %v92_v19, %v91_v18  ;;  %v139_v24 = vld [vmem:[%s5520_s1 + $0x3b0] sm:$0xff]  ;;  %v140_v26 = vld [vmem:[%s5520_s1 + $0x3b8] sm:$0xff]  ;;  %v109_v33 = vld [vmem:[%s5520_s1 + $0x2c0] sm:$0xff] }
  0x25   :  { %1222 = vmatmul.mubr.bf16.vlgmr.msra.gmra.mrb[0].mxu0 %v3297_v40  ;;  %v123_v27 = vld [vmem:[%s5520_s1 + $0x330] sm:$0xff]  ;;  %v124_v28 = vld [vmem:[%s5520_s1 + $0x338] sm:$0xff]  ;;  %v266_v30 = vpack.c.bf16 %v140_v26, %v139_v24  ;;  %v110_v34 = vld [vmem:[%s5520_s1 + $0x2c8] sm:$0xff] }
  0x26   :  { %1351 = vmatmul.mubr.bf16.vlgmr.msra.gmra.mrb[0].mxu1 %v3300_v45  ;;  %3031 = vmatpush3.bf16.msra.mxu0 %v239_v51  ;;  %v258_v31 = vpack.c.bf16 %v124_v28, %v123_v27  ;;  %v3317_v32 = vld [vmem:[%s5521_s0 + $0x12c] ss:$48 sps:$4 sm:$0xff]   ;;  %v93_v35 = vld [vmem:[%s5520_s1 + $0x240] sm:$0xff]  ;;  %v251_v37 = vpack.c.bf16 %v110_v34, %v109_v33  ;;  %v3320_v46 = vld [vmem:[%s5521_s0 + $0x128] ss:$48 sps:$4 sm:$0xff]  }
  0x27   :  { %3119 = vmatpush3.bf16.msra.mxu1 %v255_v54  ;;  %1229 = vmatprep.mubr.bf16.mxu0 %v3303_v49  ;;  %v94_v36 = vld [vmem:[%s5520_s1 + $0x248] sm:$0xff]  ;;  %v141_v39 = vld [vmem:[%s5520_s1 + $0x3c0] sm:$0xff]  ;;  %v111_v49 = vld [vmem:[%s5520_s1 + $0x2d0] sm:$0xff] }
  0x28   :  { %1358 = vmatprep.mubr.bf16.mxu1 %v3305_v52  ;;  %3032 = vmatprep.subr.bf16.mxu0 %v248_v58  ;;  %v243_v38 = vpack.c.bf16 %v94_v36, %v93_v35  ;;  %v142_v40 = vld [vmem:[%s5520_s1 + $0x3c8] sm:$0xff]  ;;  %v125_v41 = vld [vmem:[%s5520_s1 + $0x340] sm:$0xff]  ;;  %v112_v50 = vld [vmem:[%s5520_s1 + $0x2d8] sm:$0xff] }
  0x29   :  { %3120 = vmatprep.subr.bf16.mxu1 %v264_v61  ;;  %v267_v42 = vpack.c.bf16 %v142_v40, %v141_v39  ;;  %v126_v43 = vld [vmem:[%s5520_s1 + $0x348] sm:$0xff]  ;;  %v3319_v44 = vld [vmem:[%s5521_s0 + $0x120] ss:$48 sps:$4 sm:$0xff]   ;;  %v3321_v47 = vld [vmem:[%s5521_s0 + $0x184] ss:$48 sps:$4 sm:$0xff]   ;;  %v252_v52 = vpack.c.bf16 %v112_v50, %v111_v49 }
  0x2a   :  { %3033 = vmatpush3.bf16.msra.mxu0 %v240_v62  ;;  %v259_v45 = vpack.c.bf16 %v126_v43, %v125_v41  ;;  %v3323_v48 = vld [vmem:[%s5521_s0 + $0x18c] ss:$48 sps:$4 sm:$0xff]   ;;  %v95_v51 = vld [vmem:[%s5520_s1 + $0x250] sm:$0xff]  ;;  %v3326_v62 = vld [vmem:[%s5521_s0 + $0x188] ss:$48 sps:$4 sm:$0xff]  }
  0x2b   :  { %3121 = vmatpush3.bf16.msra.mxu1 %v256_v0  ;;  %3034 = vmatprep.subr.bf16.mxu0 %v249_v4  ;;  %v96_v53 = vld [vmem:[%s5520_s1 + $0x258] sm:$0xff]  ;;  %v143_v55 = vld [vmem:[%s5520_s1 + $0x3d0] sm:$0xff]  ;;  %v113_v1 = vld [vmem:[%s5520_s1 + $0x2e0] sm:$0xff] }
  0x2c   :  { %3122 = vmatprep.subr.bf16.mxu1 %v265_v12  ;;  %v244_v54 = vpack.c.bf16 %v96_v53, %v95_v51  ;;  %v144_v56 = vld [vmem:[%s5520_s1 + $0x3d8] sm:$0xff]  ;;  %v127_v57 = vld [vmem:[%s5520_s1 + $0x350] sm:$0xff]  ;;  %v114_v2 = vld [vmem:[%s5520_s1 + $0x2e8] sm:$0xff] }
  0x2d   :  { %1230 = vmatmul.mubr.bf16.gmra.mrb[4].mxu0 %v3307_v63  ;;  %v268_v58 = vpack.c.bf16 %v144_v56, %v143_v55  ;;  %v128_v59 = vld [vmem:[%s5520_s1 + $0x358] sm:$0xff]  ;;  %v3325_v60 = vld [vmem:[%s5521_s0 + $0x180] ss:$48 sps:$4 sm:$0xff]   ;;  %v3327_v63 = vld [vmem:[%s5521_s0 + $0x1e4] ss:$48 sps:$4 sm:$0xff]   ;;  %v253_v4 = vpack.c.bf16 %v114_v2, %v113_v1 }
  0x2e   :  { %1359 = vmatmul.mubr.bf16.gmra.mrb[4].mxu1 %v3308_v3  ;;  %1237 = vmatprep.mubr.bf16.mxu0 %v3309_v11  ;;  %v260_v61 = vpack.c.bf16 %v128_v59, %v127_v57  ;;  %v3329_v0 = vld [vmem:[%s5521_s0 + $0x1ec] ss:$48 sps:$4 sm:$0xff]   ;;  %v97_v3 = vld [vmem:[%s5520_s1 + $0x260] sm:$0xff]  ;;  %v99_v16 = vld [vmem:[%s5520_s1 + $0x270] sm:$0xff] }
  0x2f   :  { %1366 = vmatprep.mubr.bf16.mxu1 %v3311_v13  ;;  %3035 = vmatpush3.bf16.msra.mxu0 %v241_v14  ;;  %v98_v5 = vld [vmem:[%s5520_s1 + $0x268] sm:$0xff]  ;;  %v145_v6 = vld [vmem:[%s5520_s1 + $0x3e0] sm:$0xff]  ;;  %v115_v13 = vld [vmem:[%s5520_s1 + $0x2f0] sm:$0xff] }
  0x30   :  { %3123 = vmatpush3.bf16.msra.mxu1 %v257_v15  ;;  %3036 = vmatprep.subr.bf16.mxu0 %v250_v20  ;;  %v146_v7 = vld [vmem:[%s5520_s1 + $0x3e8] sm:$0xff]  ;;  %v245_v8 = vpack.c.bf16 %v98_v5, %v97_v3  ;;  %v129_v10 = vld [vmem:[%s5520_s1 + $0x360] sm:$0xff]  ;;  %v116_v14 = vld [vmem:[%s5520_s1 + $0x2f8] sm:$0xff] }
  0x31   :  { %3124 = vmatprep.subr.bf16.mxu1 %v266_v30  ;;  %v269_v9 = vpack.c.bf16 %v146_v7, %v145_v6  ;;  %v130_v11 = vld [vmem:[%s5520_s1 + $0x368] sm:$0xff]  ;;  %v254_v15 = vpack.c.bf16 %v116_v14, %v115_v13  ;;  %v100_v17 = vld [vmem:[%s5520_s1 + $0x278] sm:$0xff]  ;;  %v3331_v18 = vld [vmem:[%s5521_s0 + $0x1e0] ss:$48 sps:$4 sm:$0xff]  }
  0x32   :  { %v261_v12 = vpack.c.bf16 %v130_v11, %v129_v10  ;;  %v246_v19 = vpack.c.bf16 %v100_v17, %v99_v16  ;;  %v3332_v20 = vld [vmem:[%s5521_s0 + $0x1e8] ss:$48 sps:$4 sm:$0xff]   ;;  %v131_v27 = vld [vmem:[%s5520_s1 + $0x370] sm:$0xff]  ;;  %v165_v30 = vld [vmem:[%s5520_s1 + $0x480] sm:$0xff] }
  0x33   :  { %3037 = vmatpush3.bf16.msra.mxu0 %v242_v21  ;;  %v3333_v21 = vld [vmem:[%s5521_s0 + $0x244] ss:$48 sps:$4 sm:$0xff]   ;;  %v148_v24 = vld [vmem:[%s5520_s1 + $0x3f8] sm:$0xff]  ;;  %v3337_v33 = vld [vmem:[%s5521_s0 + $0x240] ss:$48 sps:$4 sm:$0xff]  }
  0x34   :  { %3125 = vmatpush3.bf16.msra.mxu1 %v258_v31  ;;  %3038 = vmatprep.subr.bf16.mxu0 %v251_v37  ;;  %v132_v28 = vld [vmem:[%s5520_s1 + $0x378] sm:$0xff]  ;;  %v166_v31 = vld [vmem:[%s5520_s1 + $0x488] sm:$0xff]  ;;  %v3339_v35 = vld [vmem:[%s5521_s0 + $0x2a4] ss:$48 sps:$4 sm:$0xff]  }
  0x35   :  { %1238 = vmatmul.mubr.bf16.gmra.mrb[8].mxu0 %v3313_v22  ;;  %3126 = vmatprep.subr.bf16.mxu1 %v267_v42  ;;  %v3335_v22 = vld [vmem:[%s5521_s0 + $0x24c] ss:$48 sps:$4 sm:$0xff]   ;;  %v3338_v34 = vld [vmem:[%s5521_s0 + $0x248] ss:$48 sps:$4 sm:$0xff]   ;;  %v3343_v37 = vld [vmem:[%s5521_s0 + $0x2a0] ss:$48 sps:$4 sm:$0xff]  }
  0x36   :  { %1367 = vmatmul.mubr.bf16.gmra.mrb[8].mxu1 %v3314_v23  ;;  %1245 = vmatprep.mubr.bf16.mxu0 %v3315_v29  ;;  %v147_v23 = vld [vmem:[%s5520_s1 + $0x3f0] sm:$0xff]  ;;  %v262_v29 = vpack.c.bf16 %v132_v28, %v131_v27  ;;  %v3341_v36 = vld [vmem:[%s5521_s0 + $0x2ac] ss:$48 sps:$4 sm:$0xff]   ;;  %v3350_v42 = vld [vmem:[%s5521_s0 + $0x308] ss:$48 sps:$4 sm:$0xff]  }
  0x37   :  { %1374 = vmatprep.mubr.bf16.mxu1 %v3317_v32  ;;  %3039 = vmatpush3.bf16.msra.mxu0 %v243_v38  ;;  %v270_v26 = vpack.c.bf16 %v148_v24, %v147_v23  ;;  %v279_v32 = vpack.c.bf16 %v166_v31, %v165_v30  ;;  %v3344_v38 = vld [vmem:[%s5521_s0 + $0x2a8] ss:$48 sps:$4 sm:$0xff]   ;;  %v3345_v39 = vld [vmem:[%s5521_s0 + $0x304] ss:$48 sps:$4 sm:$0xff]   ;;  %v3347_v40 = vld [vmem:[%s5521_s0 + $0x30c] ss:$48 sps:$4 sm:$0xff]  }
  0x38   :  { %3127 = vmatpush3.bf16.msra.mxu1 %v259_v45  ;;  %3040 = vmatprep.subr.bf16.mxu0 %v252_v52  ;;  %v3349_v41 = vld [vmem:[%s5521_s0 + $0x300] ss:$48 sps:$4 sm:$0xff]   ;;  %v3351_v43 = vld [vmem:[%s5521_s0 + $0x364] ss:$48 sps:$4 sm:$0xff]   ;;  %v3362_v50 = vld [vmem:[%s5521_s0 + $0x3c8] ss:$48 sps:$4 sm:$0xff]  }
  0x39   :  { %3128 = vmatprep.subr.bf16.mxu1 %v268_v58  ;;  %v3355_v45 = vld [vmem:[%s5521_s0 + $0x360] ss:$48 sps:$4 sm:$0xff]   ;;  %v3363_v51 = vld [vmem:[%s5521_s0 + $0x424] ss:$48 sps:$4 sm:$0xff]   ;;  %v3365_v52 = vld [vmem:[%s5521_s0 + $0x42c] ss:$48 sps:$4 sm:$0xff]  }
  0x3a   :  { %v3361_v49 = vld [vmem:[%s5521_s0 + $0x3c0] ss:$48 sps:$4 sm:$0xff]   ;;  %v3371_v55 = vld [vmem:[%s5521_s0 + $0x14] ss:$48 sps:$4 sm:$0xff]   ;;  %v3374_v56 = vld [vmem:[%s5521_s0 + $0x1c] ss:$48 sps:$4 sm:$0xff]  }
  0x3b   :  { %3041 = vmatpush3.bf16.msra.mxu0 %v244_v54  ;;  %v3367_v53 = vld [vmem:[%s5521_s0 + $0x420] ss:$48 sps:$4 sm:$0xff]   ;;  %v3368_v54 = vld [vmem:[%s5521_s0 + $0x428] ss:$48 sps:$4 sm:$0xff]   ;;  %v3375_v1 = vld [vmem:[%s5521_s0 + $0x74] ss:$48 sps:$4 sm:$0xff]  }
  0x3c   :  { %3129 = vmatpush3.bf16.msra.mxu1 %v260_v61  ;;  %3042 = vmatprep.subr.bf16.mxu0 %v253_v4  ;;  %v149_v57 = vld [vmem:[%s5520_s1 + $0x400] sm:$0xff]  ;;  %v150_v58 = vld [vmem:[%s5520_s1 + $0x408] sm:$0xff]  ;;  %v151_v2 = vld [vmem:[%s5520_s1 + $0x410] sm:$0xff] }
  0x3d   :  { %1246 = vmatmul.mubr.bf16.gmra.mrb[12].mxu0 %v3319_v44  ;;  %3130 = vmatprep.subr.bf16.mxu1 %v269_v9  ;;  %v3353_v44 = vld [vmem:[%s5521_s0 + $0x36c] ss:$48 sps:$4 sm:$0xff]   ;;  %v3369_v59 = vld [vmem:[%s5521_s0 + $0x10] ss:$48 sps:$4 sm:$0xff]   ;;  %v3372_v61 = vld [vmem:[%s5521_s0 + $0x18] ss:$48 sps:$4 sm:$0xff]   ;;  %v271_v3 = vpack.c.bf16 %v150_v58, %v149_v57 }
  0x3e   :  { %1375 = vmatmul.mubr.bf16.gmra.mrb[12].mxu1 %v3320_v46  ;;  %1253 = vmatprep.mubr.bf16.mxu0 %v3321_v47  ;;  %v3356_v46 = vld [vmem:[%s5521_s0 + $0x368] ss:$48 sps:$4 sm:$0xff]   ;;  %v3357_v47 = vld [vmem:[%s5521_s0 + $0x3c4] ss:$48 sps:$4 sm:$0xff]   ;;  %v3378_v4 = vld [vmem:[%s5521_s0 + $0x7c] ss:$48 sps:$4 sm:$0xff]  }
  0x3f   :  { %1382 = vmatprep.mubr.bf16.mxu1 %v3323_v48  ;;  %3043 = vmatpush3.bf16.msra.mxu0 %v245_v8  ;;  %v3359_v48 = vld [vmem:[%s5521_s0 + $0x3cc] ss:$48 sps:$4 sm:$0xff]   ;;  %v183_v6 = vld [vmem:[%s5520_s1 + $0x510] sm:$0xff]  ;;  %v169_v9 = vld [vmem:[%s5520_s1 + $0x4a0] sm:$0xff] }
  0x40   :  { %3131 = vmatpush3.bf16.msra.mxu1 %v261_v12  ;;  %3044 = vmatprep.subr.bf16.mxu0 %v254_v15  ;;  %v152_v5 = vld [vmem:[%s5520_s1 + $0x418] sm:$0xff]  ;;  %v170_v11 = vld [vmem:[%s5520_s1 + $0x4a8] sm:$0xff]  ;;  %v3377_v13 = vld [vmem:[%s5521_s0 + $0x70] ss:$48 sps:$4 sm:$0xff]  }
  0x41   :  { %3132 = vmatprep.subr.bf16.mxu1 %v270_v26  ;;  %v184_v8 = vld [vmem:[%s5520_s1 + $0x518] sm:$0xff]  ;;  %v272_v12 = vpack.c.bf16 %v152_v5, %v151_v2  ;;  %v185_v15 = vld [vmem:[%s5520_s1 + $0x520] sm:$0xff]  ;;  %v186_v16 = vld [vmem:[%s5520_s1 + $0x528] sm:$0xff]  ;;  %v281_v17 = vpack.c.bf16 %v170_v11, %v169_v9 }
  0x42   :  { %v288_v14 = vpack.c.bf16 %v184_v8, %v183_v6  ;;  %v171_v23 = vld [vmem:[%s5520_s1 + $0x4b0] sm:$0xff]  ;;  %v172_v24 = vld [vmem:[%s5520_s1 + $0x4b8] sm:$0xff]  ;;  %v289_v26 = vpack.c.bf16 %v186_v16, %v185_v15  ;;  %v194_v57 = vld [vmem:[%s5520_s1 + $0x568] sm:$0xff] }
  0x43   :  { %3045 = vmatpush3.bf16.msra.mxu0 %v246_v19  ;;  %v3381_v19 = vld [vmem:[%s5521_s0 + $0xd4] ss:$48 sps:$4 sm:$0xff]   ;;  %v188_v28 = vld [vmem:[%s5520_s1 + $0x538] sm:$0xff]  ;;  %v282_v31 = vpack.c.bf16 %v172_v24, %v171_v23  ;;  %v178_v58 = vld [vmem:[%s5520_s1 + $0x4e8] sm:$0xff] }
  0x44   :  { %3133 = vmatpush3.bf16.msra.mxu1 %v262_v29  ;;  %3206 = vmatprep.subr.bf16.mxu0 %v279_v32  ;;  %v187_v27 = vld [vmem:[%s5520_s1 + $0x530] sm:$0xff]  ;;  %v156_v32 = vld [vmem:[%s5520_s1 + $0x438] sm:$0xff]  ;;  %v198_v15 = vld [vmem:[%s5520_s1 + $0x588] sm:$0xff] }
  0x45   :  { %1254 = vmatmul.mubr.bf16.gmra.mrb[16].mxu0 %v3325_v60  ;;  %1834 = vmatprep.subr.bf16.mxu1 %v3561_v25  ;;  %v181_v60 = vld [vmem:[%s5520_s1 + $0x500] sm:$0xff]  ;;  %v155_v30 = vld [vmem:[%s5520_s1 + $0x430] sm:$0xff]  ;;  %v3396_v5 = vld [vmem:[%s5521_s0 + $0x19c] ss:$48 sps:$4 sm:$0xff]  }
  0x46   :  { %1383 = vmatmul.mubr.bf16.gmra.mrb[16].mxu1 %v3326_v62  ;;  %1261 = vmatprep.mubr.bf16.mxu0 %v3327_v63  ;;  %v182_v62 = vld [vmem:[%s5520_s1 + $0x508] sm:$0xff]  ;;  %v167_v63 = vld [vmem:[%s5520_s1 + $0x490] sm:$0xff]  ;;  %v196_v8 = vld [vmem:[%s5520_s1 + $0x578] sm:$0xff] }
  0x47   :  { %1390 = vmatprep.mubr.bf16.mxu1 %v3329_v0  ;;  %v168_v0 = vld [vmem:[%s5520_s1 + $0x498] sm:$0xff]  ;;  %v287_v7 = vpack.c.bf16 %v182_v62, %v181_v60  ;;  %v3393_v2 = vld [vmem:[%s5521_s0 + $0x194] ss:$48 sps:$4 sm:$0xff]  }
  0x48   :  { %v280_v10 = vpack.c.bf16 %v168_v0, %v167_v63  ;;  %v161_v0 = vld [vmem:[%s5520_s1 + $0x460] sm:$0xff]  ;;  %v163_v11 = vld [vmem:[%s5520_s1 + $0x470] sm:$0xff]  ;;  %v200_v23 = vld [vmem:[%s5520_s1 + $0x598] sm:$0xff] }
  0x4d   :  { %1262 = vmatmul.mubr.bf16.gmra.mrb[20].mxu0 %v3331_v18  ;;  %v3380_v18 = vld [vmem:[%s5521_s0 + $0x78] ss:$48 sps:$4 sm:$0xff]  }
  0x4e   :  { %1391 = vmatmul.mubr.bf16.gmra.mrb[20].mxu1 %v3332_v20  ;;  %1269 = vmatprep.mubr.bf16.mxu0 %v3333_v21  ;;  %v153_v20 = vld [vmem:[%s5520_s1 + $0x420] sm:$0xff]  ;;  %v3384_v21 = vld [vmem:[%s5521_s0 + $0xdc] ss:$48 sps:$4 sm:$0xff]  }
  0x4f   :  { %1398 = vmatprep.mubr.bf16.mxu1 %v3335_v22  ;;  %v154_v22 = vld [vmem:[%s5520_s1 + $0x428] sm:$0xff] }
  0x50   :  { %v273_v29 = vpack.c.bf16 %v154_v22, %v153_v20  ;;  %v3402_v20 = vld [vmem:[%s5521_s0 + $0x1fc] ss:$48 sps:$4 sm:$0xff]   ;;  %v199_v22 = vld [vmem:[%s5520_s1 + $0x590] sm:$0xff] }
  0x51   :  { %v296_v24 = vpack.c.bf16 %v200_v23, %v199_v22  ;;  %v3468_v22 = vld [vmem:[%s5521_s0 + $0x1ac] ss:$48 sps:$4 sm:$0xff]  }
  0x55   :  { %1270 = vmatmul.mubr.bf16.gmra.mrb[24].mxu0 %v3337_v33  ;;  %v189_v33 = vld [vmem:[%s5520_s1 + $0x540] sm:$0xff] }
  0x56   :  { %1399 = vmatmul.mubr.bf16.gmra.mrb[24].mxu1 %v3338_v34  ;;  %1277 = vmatprep.mubr.bf16.mxu0 %v3339_v35  ;;  %v190_v34 = vld [vmem:[%s5520_s1 + $0x548] sm:$0xff]  ;;  %v173_v35 = vld [vmem:[%s5520_s1 + $0x4c0] sm:$0xff] }
  0x57   :  { %1406 = vmatprep.mubr.bf16.mxu1 %v3341_v36  ;;  %v174_v36 = vld [vmem:[%s5520_s1 + $0x4c8] sm:$0xff] }
  0x5d   :  { %1278 = vmatmul.mubr.bf16.gmra.mrb[28].mxu0 %v3343_v37  ;;  %v3383_v37 = vld [vmem:[%s5521_s0 + $0xd0] ss:$48 sps:$4 sm:$0xff]  }
  0x5e   :  { %1407 = vmatmul.mubr.bf16.gmra.mrb[28].mxu1 %v3344_v38  ;;  %1285 = vmatprep.mubr.bf16.mxu0 %v3345_v39  ;;  %v290_v38 = vpack.c.bf16 %v188_v28, %v187_v27  ;;  %v157_v39 = vld [vmem:[%s5520_s1 + $0x440] sm:$0xff]  ;;  %v202_v27 = vld [vmem:[%s5520_s1 + $0x5a8] sm:$0xff] }
  0x5f   :  { %1414 = vmatprep.mubr.bf16.mxu1 %v3347_v40  ;;  %v158_v40 = vld [vmem:[%s5520_s1 + $0x448] sm:$0xff]  ;;  %v3401_v28 = vld [vmem:[%s5521_s0 + $0x1f0] ss:$48 sps:$4 sm:$0xff]  }
  0x65   :  { %1286 = vmatmul.mubr.bf16.gmra.mrb[32].mxu0 %v3349_v41  ;;  %v3386_v41 = vld [vmem:[%s5521_s0 + $0xd8] ss:$48 sps:$4 sm:$0xff]  }
  0x66   :  { %1415 = vmatmul.mubr.bf16.gmra.mrb[32].mxu1 %v3350_v42  ;;  %1293 = vmatprep.mubr.bf16.mxu0 %v3351_v43  ;;  %v3387_v42 = vld [vmem:[%s5521_s0 + $0x134] ss:$48 sps:$4 sm:$0xff]   ;;  %v274_v43 = vpack.c.bf16 %v156_v32, %v155_v30 }
  0x67   :  { %1422 = vmatprep.mubr.bf16.mxu1 %v3353_v44  ;;  %v175_v44 = vld [vmem:[%s5520_s1 + $0x4d0] sm:$0xff] }
  0x68   :  { %v3405_v30 = vld [vmem:[%s5521_s0 + $0x254] ss:$48 sps:$4 sm:$0xff]  }
  0x6d   :  { %1294 = vmatmul.mubr.bf16.gmra.mrb[36].mxu0 %v3355_v45  ;;  %v176_v45 = vld [vmem:[%s5520_s1 + $0x4d8] sm:$0xff] }
  0x6e   :  { %1423 = vmatmul.mubr.bf16.gmra.mrb[36].mxu1 %v3356_v46  ;;  %1301 = vmatprep.mubr.bf16.mxu0 %v3357_v47  ;;  %v3390_v46 = vld [vmem:[%s5521_s0 + $0x13c] ss:$48 sps:$4 sm:$0xff]   ;;  %v283_v47 = vpack.c.bf16 %v174_v36, %v173_v35  ;;  %v205_v36 = vld [vmem:[%s5520_s1 + $0x5c0] sm:$0xff] }
  0x6f   :  { %1430 = vmatprep.mubr.bf16.mxu1 %v3359_v48  ;;  %v191_v48 = vld [vmem:[%s5520_s1 + $0x550] sm:$0xff] }
  0x75   :  { %1302 = vmatmul.mubr.bf16.gmra.mrb[40].mxu0 %v3361_v49  ;;  %v192_v49 = vld [vmem:[%s5520_s1 + $0x558] sm:$0xff] }
  0x76   :  { %1431 = vmatmul.mubr.bf16.gmra.mrb[40].mxu1 %v3362_v50  ;;  %1309 = vmatprep.mubr.bf16.mxu0 %v3363_v51  ;;  %v291_v50 = vpack.c.bf16 %v190_v34, %v189_v33  ;;  %v159_v51 = vld [vmem:[%s5520_s1 + $0x450] sm:$0xff]  ;;  %v292_v60 = vpack.c.bf16 %v192_v49, %v191_v48  ;;  %v204_v34 = vld [vmem:[%s5520_s1 + $0x5b8] sm:$0xff] }
  0x77   :  { %1438 = vmatprep.mubr.bf16.mxu1 %v3365_v52  ;;  %v275_v52 = vpack.c.bf16 %v158_v40, %v157_v39  ;;  %v203_v33 = vld [vmem:[%s5520_s1 + $0x5b0] sm:$0xff]  ;;  %v3410_v39 = vld [vmem:[%s5521_s0 + $0x258] ss:$48 sps:$4 sm:$0xff]   ;;  %v3426_v49 = vld [vmem:[%s5521_s0 + $0x37c] ss:$48 sps:$4 sm:$0xff]  }
  0x78   :  { %v298_v35 = vpack.c.bf16 %v204_v34, %v203_v33  ;;  %v3411_v40 = vld [vmem:[%s5521_s0 + $0x2b4] ss:$48 sps:$4 sm:$0xff]  }
  0x79   :  { %v3423_v48 = vld [vmem:[%s5521_s0 + $0x374] ss:$48 sps:$4 sm:$0xff]  }
  0x7d   :  { %1310 = vmatmul.mubr.bf16.gmra.mrb[44].mxu0 %v3367_v53  ;;  %v160_v53 = vld [vmem:[%s5520_s1 + $0x458] sm:$0xff] }
  0x7e   :  { %1439 = vmatmul.mubr.bf16.gmra.mrb[44].mxu1 %v3368_v54  ;;  %1479 = vmatprep.mubr.bf16.mxu0 %v3371_v55  ;;  %v284_v54 = vpack.c.bf16 %v176_v45, %v175_v44  ;;  %v177_v55 = vld [vmem:[%s5520_s1 + $0x4e0] sm:$0xff]  ;;  %v276_v62 = vpack.c.bf16 %v160_v53, %v159_v51  ;;  %v3416_v44 = vld [vmem:[%s5521_s0 + $0x2b8] ss:$48 sps:$4 sm:$0xff]   ;;  %v3432_v53 = vld [vmem:[%s5521_s0 + $0x3dc] ss:$48 sps:$4 sm:$0xff]  }
  0x7f   :  { %1608 = vmatprep.mubr.bf16.mxu1 %v3374_v56  ;;  %v193_v56 = vld [vmem:[%s5520_s1 + $0x560] sm:$0xff]  ;;  %v285_v63 = vpack.c.bf16 %v178_v58, %v177_v55  ;;  %v3428_v51 = vld [vmem:[%s5521_s0 + $0x378] ss:$48 sps:$4 sm:$0xff]  }
  0x80   :  { %v293_v6 = vpack.c.bf16 %v194_v57, %v193_v56  ;;  %v3417_v45 = vld [vmem:[%s5521_s0 + $0x314] ss:$48 sps:$4 sm:$0xff]   ;;  %v3434_v55 = vld [vmem:[%s5521_s0 + $0x3d8] ss:$48 sps:$4 sm:$0xff]   ;;  %v3438_v57 = vld [vmem:[%s5521_s0 + $0x43c] ss:$48 sps:$4 sm:$0xff]  }
  0x81   :  { %v3435_v56 = vld [vmem:[%s5521_s0 + $0x434] ss:$48 sps:$4 sm:$0xff]   ;;  %v3437_v58 = vld [vmem:[%s5521_s0 + $0x430] ss:$48 sps:$4 sm:$0xff]  }
  0x85   :  { %1480 = vmatmul.mubr.bf16.vlgmr.msra.gmra.mrb[48].mxu0 %v3369_v59  ;;  %v3389_v59 = vld [vmem:[%s5521_s0 + $0x130] ss:$48 sps:$4 sm:$0xff]  }
  0x86   :  { %3207 = vmatpush3.bf16.msra.mxu0 %v271_v3  ;;  %1609 = vmatmul.mubr.bf16.vlgmr.msra.gmra.mrb[48].mxu1 %v3372_v61  ;;  %v3392_v61 = vld [vmem:[%s5521_s0 + $0x138] ss:$48 sps:$4 sm:$0xff]   ;;  %v179_v3 = vld [vmem:[%s5520_s1 + $0x4f0] sm:$0xff] }
  0x87   :  { %1835 = vmatpush1.bf16.msra.mxu1 %v287_v7  ;;  %1487 = vmatprep.mubr.bf16.mxu0 %v3375_v1  ;;  %v162_v1 = vld [vmem:[%s5520_s1 + $0x468] sm:$0xff]  ;;  %v195_v7 = vld [vmem:[%s5520_s1 + $0x570] sm:$0xff] }
  0x88   :  { %1616 = vmatprep.mubr.bf16.mxu1 %v3378_v4  ;;  %3208 = vmatprep.subr.bf16.mxu0 %v280_v10  ;;  %v180_v4 = vld [vmem:[%s5520_s1 + $0x4f8] sm:$0xff]  ;;  %v277_v9 = vpack.c.bf16 %v162_v1, %v161_v0  ;;  %v3447_v0 = vld [vmem:[%s5521_s0 + $0x84] ss:$48 sps:$4 sm:$0xff]  }
  0x89   :  { %1836 = vmatprep.subr.bf16.mxu1 %v3561_v25  ;;  %v286_v10 = vpack.c.bf16 %v180_v4, %v179_v3  ;;  %v3450_v1 = vld [vmem:[%s5521_s0 + $0x8c] ss:$48 sps:$4 sm:$0xff]   ;;  %v3452_v3 = vld [vmem:[%s5521_s0 + $0x88] ss:$48 sps:$4 sm:$0xff]   ;;  %v3453_v4 = vld [vmem:[%s5521_s0 + $0xe4] ss:$48 sps:$4 sm:$0xff]  }
  0x8a   :  { %3209 = vmatpush3.bf16.msra.mxu0 %v272_v12  ;;  %v164_v12 = vld [vmem:[%s5520_s1 + $0x478] sm:$0xff] }
  0x8b   :  { %1837 = vmatpush1.bf16.msra.mxu1 %v288_v14  ;;  %3210 = vmatprep.subr.bf16.mxu0 %v281_v17  ;;  %v197_v14 = vld [vmem:[%s5520_s1 + $0x580] sm:$0xff]  ;;  %v278_v16 = vpack.c.bf16 %v164_v12, %v163_v11 }
  0x8c   :  { %1838 = vmatprep.subr.bf16.mxu1 %v3561_v25  ;;  %v3395_v17 = vld [vmem:[%s5521_s0 + $0x190] ss:$48 sps:$4 sm:$0xff]  }
  0x8d   :  { %1488 = vmatmul.mubr.bf16.gmra.mrb[52].mxu0 %v3377_v13  ;;  %v294_v13 = vpack.c.bf16 %v196_v8, %v195_v7  ;;  %v3458_v7 = vld [vmem:[%s5521_s0 + $0xe8] ss:$48 sps:$4 sm:$0xff]   ;;  %v3459_v8 = vld [vmem:[%s5521_s0 + $0x144] ss:$48 sps:$4 sm:$0xff]  }
  0x8e   :  { %1617 = vmatmul.mubr.bf16.gmra.mrb[52].mxu1 %v3380_v18  ;;  %1495 = vmatprep.mubr.bf16.mxu0 %v3381_v19  ;;  %v3398_v18 = vld [vmem:[%s5521_s0 + $0x198] ss:$48 sps:$4 sm:$0xff]   ;;  %v3399_v19 = vld [vmem:[%s5521_s0 + $0x1f4] ss:$48 sps:$4 sm:$0xff]  }
  0x8f   :  { %1624 = vmatprep.mubr.bf16.mxu1 %v3384_v21  ;;  %1839 = vmatpush1.bf16.msra.mxu1 %v289_v26  ;;  %v295_v21 = vpack.c.bf16 %v198_v15, %v197_v14  ;;  %v201_v26 = vld [vmem:[%s5520_s1 + $0x5a0] sm:$0xff] }
  0x90   :  { %3211 = vmatpush3.bf16.msra.mxu0 %v273_v29  ;;  %1840 = vmatprep.subr.bf16.mxu1 %v3561_v25  ;;  %v3404_v29 = vld [vmem:[%s5521_s0 + $0x1f8] ss:$48 sps:$4 sm:$0xff]   ;;  %v297_v32 = vpack.c.bf16 %v202_v27, %v201_v26 }
  0x91   :  { %3212 = vmatprep.subr.bf16.mxu0 %v282_v31  ;;  %v3408_v31 = vld [vmem:[%s5521_s0 + $0x25c] ss:$48 sps:$4 sm:$0xff]  }
  0x93   :  { %1841 = vmatpush1.bf16.msra.mxu1 %v290_v38  ;;  %v3407_v38 = vld [vmem:[%s5521_s0 + $0x250] ss:$48 sps:$4 sm:$0xff]  }
  0x94   :  { %1842 = vmatprep.subr.bf16.mxu1 %v3561_v25  ;;  %3213 = vmatpush3.bf16.msra.mxu0 %v274_v43  ;;  %v3413_v43 = vld [vmem:[%s5521_s0 + $0x2b0] ss:$48 sps:$4 sm:$0xff]  }
  0x95   :  { %1496 = vmatmul.mubr.bf16.gmra.mrb[56].mxu0 %v3383_v37  ;;  %3214 = vmatprep.subr.bf16.mxu0 %v283_v47  ;;  %v206_v37 = vld [vmem:[%s5520_s1 + $0x5c8] sm:$0xff] }
  0x96   :  { %1625 = vmatmul.mubr.bf16.gmra.mrb[56].mxu1 %v3386_v41  ;;  %1503 = vmatprep.mubr.bf16.mxu0 %v3387_v42  ;;  %v3414_v41 = vld [vmem:[%s5521_s0 + $0x2bc] ss:$48 sps:$4 sm:$0xff]   ;;  %v299_v42 = vpack.c.bf16 %v206_v37, %v205_v36  ;;  %v3422_v47 = vld [vmem:[%s5521_s0 + $0x318] ss:$48 sps:$4 sm:$0xff]   ;;  %v3471_v37 = vld [vmem:[%s5521_s0 + $0x204] ss:$48 sps:$4 sm:$0xff]  }
  0x97   :  { %1632 = vmatprep.mubr.bf16.mxu1 %v3390_v46  ;;  %1843 = vmatpush1.bf16.msra.mxu1 %v291_v50  ;;  %v3419_v46 = vld [vmem:[%s5521_s0 + $0x310] ss:$48 sps:$4 sm:$0xff]   ;;  %v3470_v36 = vld [vmem:[%s5521_s0 + $0x1a8] ss:$48 sps:$4 sm:$0xff]  }
  0x98   :  { %1844 = vmatprep.subr.bf16.mxu1 %v3561_v25  ;;  %3215 = vmatpush3.bf16.msra.mxu0 %v275_v52  ;;  %v3425_v50 = vld [vmem:[%s5521_s0 + $0x370] ss:$48 sps:$4 sm:$0xff]   ;;  %v3429_v52 = vld [vmem:[%s5521_s0 + $0x3d4] ss:$48 sps:$4 sm:$0xff]  }
  0x99   :  { %3216 = vmatprep.subr.bf16.mxu0 %v284_v54  ;;  %v3431_v54 = vld [vmem:[%s5521_s0 + $0x3d0] ss:$48 sps:$4 sm:$0xff]  }
  0x9b   :  { %1845 = vmatpush1.bf16.msra.mxu1 %v292_v60  ;;  %v3443_v60 = vld [vmem:[%s5521_s0 + $0x24] ss:$48 sps:$4 sm:$0xff]  }
  0x9c   :  { %1846 = vmatprep.subr.bf16.mxu1 %v3561_v25  ;;  %3217 = vmatpush3.bf16.msra.mxu0 %v276_v62  ;;  %v3441_v62 = vld [vmem:[%s5521_s0 + $0x20] ss:$48 sps:$4 sm:$0xff]  }
  0x9d   :  { %1504 = vmatmul.mubr.bf16.gmra.mrb[60].mxu0 %v3389_v59  ;;  %3218 = vmatprep.subr.bf16.mxu0 %v285_v63  ;;  %v3440_v59 = vld [vmem:[%s5521_s0 + $0x438] ss:$48 sps:$4 sm:$0xff]  }
  0x9e   :  { %1633 = vmatmul.mubr.bf16.gmra.mrb[60].mxu1 %v3392_v61  ;;  %1511 = vmatprep.mubr.bf16.mxu0 %v3393_v2  ;;  %v3446_v61 = vld [vmem:[%s5521_s0 + $0x2c] ss:$48 sps:$4 sm:$0xff]   ;;  %v3444_v63 = vld [vmem:[%s5521_s0 + $0x28] ss:$48 sps:$4 sm:$0xff]   ;;  %v3449_v2 = vld [vmem:[%s5521_s0 + $0x80] ss:$48 sps:$4 sm:$0xff]  }
  0x9f   :  { %1640 = vmatprep.mubr.bf16.mxu1 %v3396_v5  ;;  %1847 = vmatpush1.bf16.msra.mxu1 %v293_v6  ;;  %v3456_v5 = vld [vmem:[%s5521_s0 + $0xec] ss:$48 sps:$4 sm:$0xff]   ;;  %v3455_v6 = vld [vmem:[%s5521_s0 + $0xe0] ss:$48 sps:$4 sm:$0xff]  }
  0xa0   :  { %1848 = vmatprep.subr.bf16.mxu1 %v3561_v25  ;;  %3219 = vmatpush3.bf16.msra.mxu0 %v277_v9  ;;  %v3462_v9 = vld [vmem:[%s5521_s0 + $0x14c] ss:$48 sps:$4 sm:$0xff]  }
  0xa1   :  { %3220 = vmatprep.subr.bf16.mxu0 %v286_v10 }
  0xa3   :  { %1849 = vmatpush1.bf16.msra.mxu1 %v294_v13  ;;  %v3461_v13 = vld [vmem:[%s5521_s0 + $0x140] ss:$48 sps:$4 sm:$0xff]  }
  0xa4   :  { %1850 = vmatprep.subr.bf16.mxu1 %v3561_v25  ;;  %3221 = vmatpush3.bf16.msra.mxu0 %v278_v16 }
  0xa5   :  { %1512 = vmatmul.mubr.bf16.gmra.mrb[64].mxu0 %v3395_v17  ;;  %v3464_v17 = vld [vmem:[%s5521_s0 + $0x148] ss:$48 sps:$4 sm:$0xff]  }
  0xa6   :  { %1641 = vmatmul.mubr.bf16.gmra.mrb[64].mxu1 %v3398_v18  ;;  %1519 = vmatprep.mubr.bf16.mxu0 %v3399_v19  ;;  %v3465_v18 = vld [vmem:[%s5521_s0 + $0x1a4] ss:$48 sps:$4 sm:$0xff]  }
  0xa7   :  { %1648 = vmatprep.mubr.bf16.mxu1 %v3402_v20  ;;  %1851 = vmatpush1.bf16.msra.mxu1 %v295_v21 }
  0xa8   :  { %1852 = vmatprep.subr.bf16.mxu1 %v3561_v25 }
  0xab   :  { %1853 = vmatpush1.bf16.msra.mxu1 %v296_v24 }
  0xac   :  { %1854 = vmatprep.subr.bf16.mxu1 %v3561_v25 }
  0xad   :  { %1520 = vmatmul.mubr.bf16.gmra.mrb[68].mxu0 %v3401_v28 }
  0xae   :  { %1649 = vmatmul.mubr.bf16.gmra.mrb[68].mxu1 %v3404_v29  ;;  %1527 = vmatprep.mubr.bf16.mxu0 %v3405_v30 }
  0xaf   :  { %1656 = vmatprep.mubr.bf16.mxu1 %v3408_v31  ;;  %1855 = vmatpush1.bf16.msra.mxu1 %v297_v32  ;;  %v3467_v32 = vld [vmem:[%s5521_s0 + $0x1a0] ss:$48 sps:$4 sm:$0xff]  }
  0xb0   :  { %1856 = vmatprep.subr.bf16.mxu1 %v3561_v25 }
  0xb3   :  { %1857 = vmatpush1.bf16.msra.mxu1 %v298_v35 }
  0xb4   :  { %1858 = vmatprep.subr.bf16.mxu1 %v3561_v25  ;;  %v3420_v25 = vld [vmem:[%s5521_s0 + $0x31c] ss:$48 sps:$4 sm:$0xff]  }
  0xb5   :  { %1528 = vmatmul.mubr.bf16.gmra.mrb[72].mxu0 %v3407_v38 }
  0xb6   :  { %1657 = vmatmul.mubr.bf16.gmra.mrb[72].mxu1 %v3410_v39  ;;  %1535 = vmatprep.mubr.bf16.mxu0 %v3411_v40 }
  0xb7   :  { %1664 = vmatprep.mubr.bf16.mxu1 %v3414_v41  ;;  %1859 = vmatpush1.bf16.msra.mxu1 %v299_v42  ;;  %v3474_v41 = vld [vmem:[%s5521_s0 + $0x20c] ss:$48 sps:$4 sm:$0xff]  }
  0xbd   :  { %1536 = vmatmul.mubr.bf16.gmra.mrb[76].mxu0 %v3413_v43 }
  0xbe   :  { %1665 = vmatmul.mubr.bf16.gmra.mrb[76].mxu1 %v3416_v44  ;;  %1543 = vmatprep.mubr.bf16.mxu0 %v3417_v45 }
  0xbf   :  { %1672 = vmatprep.mubr.bf16.mxu1 %v3420_v25 }
  0xc5   :  { %1544 = vmatmul.mubr.bf16.gmra.mrb[80].mxu0 %v3419_v46 }
  0xc6   :  { %1673 = vmatmul.mubr.bf16.gmra.mrb[80].mxu1 %v3422_v47  ;;  %1551 = vmatprep.mubr.bf16.mxu0 %v3423_v48 }
  0xc7   :  { %1680 = vmatprep.mubr.bf16.mxu1 %v3426_v49  ;;  %v3473_v49 = vld [vmem:[%s5521_s0 + $0x200] ss:$48 sps:$4 sm:$0xff]  }
  0xcd   :  { %1552 = vmatmul.mubr.bf16.gmra.mrb[84].mxu0 %v3425_v50 }
  0xce   :  { %1681 = vmatmul.mubr.bf16.gmra.mrb[84].mxu1 %v3428_v51  ;;  %1559 = vmatprep.mubr.bf16.mxu0 %v3429_v52 }
  0xcf   :  { %1688 = vmatprep.mubr.bf16.mxu1 %v3432_v53  ;;  %v3476_v53 = vld [vmem:[%s5521_s0 + $0x208] ss:$48 sps:$4 sm:$0xff]  }
  0xd5   :  { %1560 = vmatmul.mubr.bf16.gmra.mrb[88].mxu0 %v3431_v54  ;;  %v3477_v54 = vld [vmem:[%s5521_s0 + $0x264] ss:$48 sps:$4 sm:$0xff]  }
  0xd6   :  { %1689 = vmatmul.mubr.bf16.gmra.mrb[88].mxu1 %v3434_v55  ;;  %1567 = vmatprep.mubr.bf16.mxu0 %v3435_v56 }
  0xd7   :  { %1696 = vmatprep.mubr.bf16.mxu1 %v3438_v57 }
  0xdd   :  { %1568 = vmatmul.mubr.bf16.gmra.mrb[92].mxu0 %v3437_v58  ;;  %v3480_v58 = vld [vmem:[%s5521_s0 + $0x26c] ss:$48 sps:$4 sm:$0xff]  }
  0xde   :  { %1697 = vmatmul.mubr.bf16.gmra.mrb[92].mxu1 %v3440_v59  ;;  %1737 = vmatprep.mubr.bf16.mxu0 %v3443_v60 }
  0xdf   :  { %2842 = vmatprep.mubr.msk.bf16.mxu1 %vm1152_vm0, %v3446_v61 }
  0xe5   :  { %1738 = vmatmul.mubr.bf16.vlgmr.msra.gmra.mrb[96].mxu0 %v3441_v62 }
  0xe6   :  { %1867 = vmatmul.mubr.bf16.vlgmr.msra.gmra.mrb[96].mxu1 %v3444_v63  ;;  %1745 = vmatprep.mubr.bf16.mxu0 %v3447_v0 }
  0xe7   :  { %2843 = vmatprep.mubr.msk.bf16.mxu1 %vm1152_vm0, %v3450_v1 }
  0xed   :  { %1746 = vmatmul.mubr.bf16.gmra.mrb[100].mxu0 %v3449_v2 }
  0xee   :  { %1875 = vmatmul.mubr.bf16.gmra.mrb[100].mxu1 %v3452_v3  ;;  %1753 = vmatprep.mubr.bf16.mxu0 %v3453_v4  ;;  %v3479_v3 = vld [vmem:[%s5521_s0 + $0x260] ss:$48 sps:$4 sm:$0xff]  }
  0xef   :  { %2844 = vmatprep.mubr.msk.bf16.mxu1 %vm1152_vm0, %v3456_v5 }
  0xf5   :  { %1754 = vmatmul.mubr.bf16.gmra.mrb[104].mxu0 %v3455_v6 }
  0xf6   :  { %1883 = vmatmul.mubr.bf16.gmra.mrb[104].mxu1 %v3458_v7  ;;  %1761 = vmatprep.mubr.bf16.mxu0 %v3459_v8  ;;  %v3482_v7 = vld [vmem:[%s5521_s0 + $0x268] ss:$48 sps:$4 sm:$0xff]   ;;  %v3483_v8 = vld [vmem:[%s5521_s0 + $0x2c4] ss:$48 sps:$4 sm:$0xff]  }
  0xf7   :  { %2845 = vmatprep.mubr.msk.bf16.mxu1 %vm1152_vm0, %v3462_v9 }
  0xf8   :  { %v2870_v10 = vpop.f32.mrb[0].mxu0 }
  0xf9   :  { %v2958_v11 = vpop.f32.mrb[0].mxu1  ;;  %v2871_v12 = vpop.f32.mrb[1].mxu0 }
  0xfa   :  { %v2872_v14 = vadd.f32 %v2871_v12, %v2870_v10  ;;  %v2959_v15 = vpop.f32.mrb[1].mxu1  ;;  %v2873_v16 = vpop.f32.mrb[2].mxu0  ;;  %v3486_v12 = vld [vmem:[%s5521_s0 + $0x2cc] ss:$48 sps:$4 sm:$0xff]  }
  0xfb   :  { %v2960_v19 = vadd.f32 %v2959_v15, %v2958_v11  ;;  %v2961_v20 = vpop.f32.mrb[2].mxu1  ;;  %v2874_v21 = vpop.f32.mrb[3].mxu0 }
  0xfc   :  { %v2875_v23 = vadd.f32 %v2874_v21, %v2873_v16  ;;  %v2962_v24 = vpop.f32.mrb[3].mxu1  ;;  %v2447_v21 = vld [vmem:[%s5522_s3 + $0x10] sm:$0xff] }
  0xfd   :  { %v4516_v26 = vadd.f32 %v2960_v19, %v2872_v14  ;;  %v2963_v27 = vadd.f32 %v2962_v24, %v2961_v20  ;;  %1762 = vmatmul.mubr.bf16.gmra.mrb[108].mxu0 %v3461_v13  ;;  %v3485_v24 = vld [vmem:[%s5521_s0 + $0x2c0] ss:$48 sps:$4 sm:$0xff]  }
  0xfe   :  { %1891 = vmatmul.mubr.bf16.gmra.mrb[108].mxu1 %v3464_v17  ;;  %1769 = vmatprep.mubr.bf16.mxu0 %v3465_v18  ;;  %v2445_v17 = vld [vmem:[%s5522_s3] sm:$0xff]  ;;  %v2446_v18 = vld [vmem:[%s5522_s3 + $0x8] sm:$0xff] }
  0xff   :  { %v4518_v28 = vadd.f32 %v2963_v27, %v2875_v23  ;;  %2846 = vmatprep.mubr.msk.bf16.mxu1 %vm1152_vm0, %v3468_v22  ;;  %2471 = vperm.xlu1 %3295, %v2445_v17   ;;  %v3488_v27 = vld [vmem:[%s5521_s0 + $0x2c8] ss:$48 sps:$4 sm:$0xff]  }
 0x100   :  { %v2876_v29 = vpop.f32.mrb[4].mxu0  ;;  %2476 = vperm.xlu0 %3296, %v2446_v18   ;;  %v3504_v18 = vld [vmem:[%s5521_s0 + $0x3ec] ss:$48 sps:$4 sm:$0xff]  }
 0x101   :  { %v2964_v30 = vpop.f32.mrb[4].mxu1  ;;  %v2877_v31 = vpop.f32.mrb[5].mxu0 }
 0x102   :  { %v2878_v33 = vadd.f32 %v2877_v31, %v2876_v29  ;;  %v2965_v34 = vpop.f32.mrb[5].mxu1  ;;  %v2879_v35 = vpop.f32.mrb[6].mxu0 }
 0x103   :  { %v2966_v38 = vadd.f32 %v2965_v34, %v2964_v30  ;;  %v2967_v39 = vpop.f32.mrb[6].mxu1  ;;  %v2880_v40 = vpop.f32.mrb[7].mxu0  ;;  %2481 = vperm.xlu1 %3295, %v2447_v21  }
 0x104   :  { %v2881_v42 = vadd.f32 %v2880_v40, %v2879_v35  ;;  %v2968_v43 = vpop.f32.mrb[7].mxu1 }
 0x105   :  { %v4533_v44 = vadd.f32 %v2966_v38, %v2878_v33  ;;  %v2969_v45 = vadd.f32 %v2968_v43, %v2967_v39  ;;  %1770 = vmatmul.mubr.bf16.gmra.mrb[112].mxu0 %v3467_v32  ;;  %v3489_v32 = vld [vmem:[%s5521_s0 + $0x324] ss:$48 sps:$4 sm:$0xff]   ;;  %v2448_v33 = vld [vmem:[%s5522_s3 + $0x18] sm:$0xff]  ;;  %v2450_v43 = vld [vmem:[%s5522_s3 + $0x28] sm:$0xff] }
 0x106   :  { %1899 = vmatmul.mubr.bf16.gmra.mrb[112].mxu1 %v3470_v36  ;;  %1777 = vmatprep.mubr.bf16.mxu0 %v3471_v37  ;;  %v3492_v37 = vld [vmem:[%s5521_s0 + $0x32c] ss:$48 sps:$4 sm:$0xff]  }
 0x107   :  { %v4535_v25 = vadd.f32 %v2969_v45, %v2881_v42  ;;  %2847 = vmatprep.mubr.msk.bf16.mxu1 %vm1152_vm0, %v3474_v41  ;;  %2486 = vperm.xlu0 %3296, %v2448_v33   ;;  %v2449_v42 = vld [vmem:[%s5522_s3 + $0x20] sm:$0xff] }
 0x108   :  { %v2882_v46 = vpop.f32.mrb[8].mxu0  ;;  %2491 = vperm.xlu1 %3295, %v2449_v42  }
 0x109   :  { %v2970_v47 = vpop.f32.mrb[8].mxu1  ;;  %v2883_v48 = vpop.f32.mrb[9].mxu0 }
 0x10a   :  { %v2884_v50 = vadd.f32 %v2883_v48, %v2882_v46  ;;  %v2971_v51 = vpop.f32.mrb[9].mxu1  ;;  %v2885_v52 = vpop.f32.mrb[10].mxu0 }
 0x10b   :  { %v2972_v55 = vadd.f32 %v2971_v51, %v2970_v47  ;;  %v2973_v56 = vpop.f32.mrb[10].mxu1  ;;  %v2886_v57 = vpop.f32.mrb[11].mxu0  ;;  %2496 = vperm.xlu0 %3296, %v2450_v43   ;;  %v2451_v47 = vld [vmem:[%s5522_s3 + $0x30] sm:$0xff]  ;;  %v3494_v51 = vld [vmem:[%s5521_s0 + $0x328] ss:$48 sps:$4 sm:$0xff]  }
 0x10c   :  { %v2887_v59 = vadd.f32 %v2886_v57, %v2885_v52  ;;  %v2974_v60 = vpop.f32.mrb[11].mxu1  ;;  %2501 = vperm.xlu1 %3295, %v2451_v47  }
 0x10d   :  { %v4550_v61 = vadd.f32 %v2972_v55, %v2884_v50  ;;  %v2975_v62 = vadd.f32 %v2974_v60, %v2973_v56  ;;  %1778 = vmatmul.mubr.bf16.gmra.mrb[116].mxu0 %v3473_v49  ;;  %v3491_v50 = vld [vmem:[%s5521_s0 + $0x320] ss:$48 sps:$4 sm:$0xff]   ;;  %v3495_v55 = vld [vmem:[%s5521_s0 + $0x384] ss:$48 sps:$4 sm:$0xff]   ;;  %v2452_v56 = vld [vmem:[%s5522_s3 + $0x38] sm:$0xff] }
 0x10e   :  { %1907 = vmatmul.mubr.bf16.gmra.mrb[116].mxu1 %v3476_v53  ;;  %1785 = vmatprep.mubr.bf16.mxu0 %v3477_v54  ;;  %v3498_v60 = vld [vmem:[%s5521_s0 + $0x38c] ss:$48 sps:$4 sm:$0xff]  }
 0x10f   :  { %v4552_v63 = vadd.f32 %v2975_v62, %v2887_v59  ;;  %2848 = vmatprep.mubr.msk.bf16.mxu1 %vm1152_vm0, %v3480_v58  ;;  %2506 = vperm.xlu0 %3296, %v2452_v56   ;;  %v3512_v56 = vld [vmem:[%s5521_s0 + $0x448] ss:$48 sps:$4 sm:$0xff]  }
 0x110   :  { %v2888_v0 = vpop.f32.mrb[12].mxu0 }
 0x111   :  { %v2976_v1 = vpop.f32.mrb[12].mxu1  ;;  %v2889_v2 = vpop.f32.mrb[13].mxu0 }
 0x112   :  { %v2890_v4 = vadd.f32 %v2889_v2, %v2888_v0  ;;  %v2977_v5 = vpop.f32.mrb[13].mxu1  ;;  %v2891_v6 = vpop.f32.mrb[14].mxu0 }
 0x113   :  { %v2978_v9 = vadd.f32 %v2977_v5, %v2976_v1  ;;  %v2979_v10 = vpop.f32.mrb[14].mxu1  ;;  %v2892_v11 = vpop.f32.mrb[15].mxu0 }
 0x114   :  { %v2893_v13 = vadd.f32 %v2892_v11, %v2891_v6  ;;  %v2980_v14 = vpop.f32.mrb[15].mxu1 }
 0x115   :  { %v4567_v15 = vadd.f32 %v2978_v9, %v2890_v4  ;;  %v2981_v16 = vadd.f32 %v2980_v14, %v2979_v10  ;;  %1786 = vmatmul.mubr.bf16.gmra.mrb[120].mxu0 %v3479_v3  ;;  %v2453_v3 = vld [vmem:[%s5522_s3 + $0x40] sm:$0xff] }
 0x116   :  { %1915 = vmatmul.mubr.bf16.gmra.mrb[120].mxu1 %v3482_v7  ;;  %1793 = vmatprep.mubr.bf16.mxu0 %v3483_v8  ;;  %v3497_v8 = vld [vmem:[%s5521_s0 + $0x380] ss:$48 sps:$4 sm:$0xff]  }
 0x117   :  { %v4575_v19 = vadd.f32 %v2981_v16, %v2893_v13  ;;  %2849 = vmatprep.mubr.msk.bf16.mxu1 %vm1152_vm0, %v3486_v12  ;;  %2511 = vperm.xlu1 %3295, %v2453_v3   ;;  %v3500_v12 = vld [vmem:[%s5521_s0 + $0x388] ss:$48 sps:$4 sm:$0xff]   ;;  %v3501_v13 = vld [vmem:[%s5521_s0 + $0x3e4] ss:$48 sps:$4 sm:$0xff]  }
 0x118   :  { %v2894_v20 = vpop.f32.mrb[16].mxu0 }
 0x119   :  { %v2982_v22 = vpop.f32.mrb[16].mxu1  ;;  %v2895_v23 = vpop.f32.mrb[17].mxu0 }
 0x11a   :  { %v2896_v29 = vadd.f32 %v2895_v23, %v2894_v20  ;;  %v2983_v30 = vpop.f32.mrb[17].mxu1  ;;  %v2897_v31 = vpop.f32.mrb[18].mxu0 }
 0x11b   :  { %v2984_v34 = vadd.f32 %v2983_v30, %v2982_v22  ;;  %v2985_v35 = vpop.f32.mrb[18].mxu1  ;;  %v2898_v36 = vpop.f32.mrb[19].mxu0 }
 0x11c   :  { %v2899_v38 = vadd.f32 %v2898_v36, %v2897_v31  ;;  %v2986_v39 = vpop.f32.mrb[19].mxu1  ;;  %v3503_v31 = vld [vmem:[%s5521_s0 + $0x3e0] ss:$48 sps:$4 sm:$0xff]   ;;  %v3507_v36 = vld [vmem:[%s5521_s0 + $0x444] ss:$48 sps:$4 sm:$0xff]  }
 0x11d   :  { %v4596_v40 = vadd.f32 %v2984_v34, %v2896_v29  ;;  %v2987_v41 = vadd.f32 %v2986_v39, %v2985_v35  ;;  %1794 = vmatmul.mubr.bf16.gmra.mrb[124].mxu0 %v3485_v24  ;;  %v3506_v35 = vld [vmem:[%s5521_s0 + $0x3e8] ss:$48 sps:$4 sm:$0xff]  }
 0x11e   :  { %1923 = vmatmul.mubr.bf16.gmra.mrb[124].mxu1 %v3488_v27  ;;  %1801 = vmatprep.mubr.bf16.mxu0 %v3489_v32 }
 0x11f   :  { %v4604_v45 = vadd.f32 %v2987_v41, %v2899_v38  ;;  %2850 = vmatprep.mubr.msk.bf16.mxu1 %vm1152_vm0, %v3492_v37  ;;  %v3510_v41 = vld [vmem:[%s5521_s0 + $0x44c] ss:$48 sps:$4 sm:$0xff]  }
 0x120   :  { %v2900_v46 = vpop.f32.mrb[20].mxu0 }
 0x121   :  { %v2988_v48 = vpop.f32.mrb[20].mxu1  ;;  %v2901_v49 = vpop.f32.mrb[21].mxu0 }
 0x122   :  { %v2902_v52 = vadd.f32 %v2901_v49, %v2900_v46  ;;  %v2989_v53 = vpop.f32.mrb[21].mxu1  ;;  %v2903_v54 = vpop.f32.mrb[22].mxu0 }
 0x123   :  { %v2990_v57 = vadd.f32 %v2989_v53, %v2988_v48  ;;  %v2991_v58 = vpop.f32.mrb[22].mxu1  ;;  %v2904_v59 = vpop.f32.mrb[23].mxu0 }
 0x124   :  { %v2905_v62 = vadd.f32 %v2904_v59, %v2903_v54  ;;  %v2992_v0 = vpop.f32.mrb[23].mxu1 }
 0x125   :  { %v4625_v1 = vadd.f32 %v2990_v57, %v2902_v52  ;;  %v2993_v2 = vadd.f32 %v2992_v0, %v2991_v58  ;;  %1802 = vmatmul.mubr.bf16.gmra.mrb[128].mxu0 %v3491_v50  ;;  %v3509_v52 = vld [vmem:[%s5521_s0 + $0x440] ss:$48 sps:$4 sm:$0xff]  }
 0x126   :  { %1931 = vmatmul.mubr.bf16.gmra.mrb[128].mxu1 %v3494_v51  ;;  %1809 = vmatprep.mubr.bf16.mxu0 %v3495_v55 }
 0x127   :  { %v4630_v4 = vadd.f32 %v2993_v2, %v2905_v62  ;;  %2851 = vmatprep.mubr.msk.bf16.mxu1 %vm1152_vm0, %v3498_v60 }
 0x128   :  { %v2906_v5 = vpop.f32.mrb[24].mxu0 }
 0x129   :  { %v2994_v6 = vpop.f32.mrb[24].mxu1  ;;  %v2907_v7 = vpop.f32.mrb[25].mxu0 }
 0x12a   :  { %v2908_v9 = vadd.f32 %v2907_v7, %v2906_v5  ;;  %v2995_v10 = vpop.f32.mrb[25].mxu1  ;;  %v2909_v11 = vpop.f32.mrb[26].mxu0 }
 0x12b   :  { %v2996_v14 = vadd.f32 %v2995_v10, %v2994_v6  ;;  %v2997_v16 = vpop.f32.mrb[26].mxu1  ;;  %v2910_v17 = vpop.f32.mrb[27].mxu0 }
 0x12c   :  { %v2911_v20 = vadd.f32 %v2910_v17, %v2909_v11  ;;  %v2998_v21 = vpop.f32.mrb[27].mxu1 }
 0x12d   :  { %v4645_v22 = vadd.f32 %v2996_v14, %v2908_v9  ;;  %v2999_v23 = vadd.f32 %v2998_v21, %v2997_v16  ;;  %1810 = vmatmul.mubr.bf16.gmra.mrb[132].mxu0 %v3497_v8 }
 0x12e   :  { %1939 = vmatmul.mubr.bf16.gmra.mrb[132].mxu1 %v3500_v12  ;;  %1817 = vmatprep.mubr.bf16.mxu0 %v3501_v13 }
 0x12f   :  { %v4647_v24 = vadd.f32 %v2999_v23, %v2911_v20  ;;  %2852 = vmatprep.mubr.msk.bf16.mxu1 %vm1152_vm0, %v3504_v18 }
 0x130   :  { %v2912_v27 = vpop.f32.mrb[28].mxu0 }
 0x131   :  { %v3000_v29 = vpop.f32.mrb[28].mxu1  ;;  %v2913_v30 = vpop.f32.mrb[29].mxu0 }
 0x132   :  { %v2914_v32 = vadd.f32 %v2913_v30, %v2912_v27  ;;  %v3001_v33 = vpop.f32.mrb[29].mxu1  ;;  %v2915_v34 = vpop.f32.mrb[30].mxu0 }
 0x133   :  { %v3002_v37 = vadd.f32 %v3001_v33, %v3000_v29  ;;  %v3003_v38 = vpop.f32.mrb[30].mxu1  ;;  %v2916_v39 = vpop.f32.mrb[31].mxu0 }
 0x134   :  { %v2917_v42 = vadd.f32 %v2916_v39, %v2915_v34  ;;  %v3004_v43 = vpop.f32.mrb[31].mxu1 }
 0x135   :  { %v4662_v46 = vadd.f32 %v3002_v37, %v2914_v32  ;;  %v3005_v47 = vadd.f32 %v3004_v43, %v3003_v38  ;;  %1818 = vmatmul.mubr.bf16.gmra.mrb[136].mxu0 %v3503_v31 }
 0x136   :  { %1947 = vmatmul.mubr.bf16.gmra.mrb[136].mxu1 %v3506_v35  ;;  %1825 = vmatprep.mubr.bf16.mxu0 %v3507_v36 }
 0x137   :  { %v4664_v48 = vadd.f32 %v3005_v47, %v2917_v42  ;;  %2853 = vmatprep.mubr.msk.bf16.mxu1 %vm1152_vm0, %v3510_v41 }
 0x138   :  { %v2918_v49 = vpop.f32.mrb[32].mxu0 }
 0x139   :  { %v3006_v50 = vpop.f32.mrb[32].mxu1  ;;  %v2919_v51 = vpop.f32.mrb[33].mxu0 }
 0x13a   :  { %v2920_v53 = vadd.f32 %v2919_v51, %v2918_v49  ;;  %v3007_v54 = vpop.f32.mrb[33].mxu1  ;;  %v2921_v55 = vpop.f32.mrb[34].mxu0 }
 0x13b   :  { %v3008_v57 = vadd.f32 %v3007_v54, %v3006_v50  ;;  %v3009_v58 = vpop.f32.mrb[34].mxu1  ;;  %v2922_v59 = vpop.f32.mrb[35].mxu0 }
 0x13c   :  { %v2923_v60 = vadd.f32 %v2922_v59, %v2921_v55  ;;  %v3010_v62 = vpop.f32.mrb[35].mxu1 }
 0x13d   :  { %v4673_v0 = vadd.f32 %v3008_v57, %v2920_v53  ;;  %v3011_v2 = vadd.f32 %v3010_v62, %v3009_v58  ;;  %1826 = vmatmul.mubr.bf16.gmra.mrb[140].mxu0 %v3509_v52 }
 0x13e   :  { %1955 = vmatmul.mubr.bf16.gmra.mrb[140].mxu1 %v3512_v56 }
 0x13f   :  { %v4675_v3 = vadd.f32 %v3011_v2, %v2923_v60 }
 0x140   :  { %v2924_v5 = vpop.f32.mrb[36].mxu0 }
 0x141   :  { %v3012_v6 = vpop.f32.mrb[36].mxu1  ;;  %v2925_v7 = vpop.f32.mrb[37].mxu0 }
 0x142   :  { %v2926_v8 = vadd.f32 %v2925_v7, %v2924_v5  ;;  %v3013_v9 = vpop.f32.mrb[37].mxu1  ;;  %v2927_v10 = vpop.f32.mrb[38].mxu0 }
 0x143   :  { %v3014_v11 = vadd.f32 %v3013_v9, %v3012_v6  ;;  %v3015_v12 = vpop.f32.mrb[38].mxu1  ;;  %v2928_v13 = vpop.f32.mrb[39].mxu0 }
 0x144   :  { %v2929_v14 = vadd.f32 %v2928_v13, %v2927_v10  ;;  %v3016_v16 = vpop.f32.mrb[39].mxu1 }
 0x145   :  { %v4677_v17 = vadd.f32 %v3014_v11, %v2926_v8  ;;  %v3017_v18 = vadd.f32 %v3016_v16, %v3015_v12 }
 0x147   :  { %v4679_v20 = vadd.f32 %v3017_v18, %v2929_v14 }
 0x148   :  { %v2930_v21 = vpop.f32.mrb[40].mxu0 }
 0x149   :  { %v3018_v23 = vpop.f32.mrb[40].mxu1  ;;  %v2931_v27 = vpop.f32.mrb[41].mxu0 }
 0x14a   :  { %v2932_v29 = vadd.f32 %v2931_v27, %v2930_v21  ;;  %v3019_v30 = vpop.f32.mrb[41].mxu1  ;;  %v2933_v31 = vpop.f32.mrb[42].mxu0 }
 0x14b   :  { %v3020_v32 = vadd.f32 %v3019_v30, %v3018_v23  ;;  %v3021_v33 = vpop.f32.mrb[42].mxu1  ;;  %v2934_v34 = vpop.f32.mrb[43].mxu0 }
 0x14c   :  { %v2935_v35 = vadd.f32 %v2934_v34, %v2933_v31  ;;  %v3022_v36 = vpop.f32.mrb[43].mxu1 }
 0x14d   :  { %v4681_v37 = vadd.f32 %v3020_v32, %v2932_v29  ;;  %v3023_v38 = vadd.f32 %v3022_v36, %v3021_v33 }
 0x14f   :  { %v4683_v39 = vadd.f32 %v3023_v38, %v2935_v35 }
 0x150   :  { %v2936_v41 = vpop.f32.mrb[44].mxu0 }
 0x151   :  { %v3024_v42 = vpop.f32.mrb[44].mxu1  ;;  %v2937_v43 = vpop.f32.mrb[45].mxu0 }
 0x152   :  { %v2938_v47 = vadd.f32 %v2937_v43, %v2936_v41  ;;  %v3025_v49 = vpop.f32.mrb[45].mxu1  ;;  %v2939_v50 = vpop.f32.mrb[46].mxu0 }
 0x153   :  { %v3026_v51 = vadd.f32 %v3025_v49, %v3024_v42  ;;  %v3027_v52 = vpop.f32.mrb[46].mxu1  ;;  %v2940_v53 = vpop.f32.mrb[47].mxu0 }
 0x154   :  { %v2941_v54 = vadd.f32 %v2940_v53, %v2939_v50  ;;  %v3028_v55 = vpop.f32.mrb[47].mxu1 }
 0x155   :  { %v4685_v56 = vadd.f32 %v3026_v51, %v2938_v47  ;;  %v3029_v57 = vadd.f32 %v3028_v55, %v3027_v52 }
 0x157   :  { %v4687_v58 = vadd.f32 %v3029_v57, %v2941_v54 }
 0x158   :  { %v3046_v59 = vpop.f32.mrb[48].mxu0 }
 0x159   :  { %v3047_v60 = vpop.f32.mrb[49].mxu0  ;;  %v3134_v62 = vpop.f32.mrb[48].mxu1 }
 0x15a   :  { %v3048_v2 = vadd.f32 %v3047_v60, %v3046_v59  ;;  %v3049_v5 = vpop.f32.mrb[50].mxu0  ;;  %v3135_v6 = vpop.f32.mrb[49].mxu1 }
 0x15b   :  { %v3050_v7 = vpop.f32.mrb[51].mxu0  ;;  %v3136_v8 = vadd.f32 %v3135_v6, %v3134_v62  ;;  %v3137_v9 = vpop.f32.mrb[50].mxu1 }
 0x15c   :  { %v1482_v10 = vadd.f32 %v3048_v2, %v4516_v26  ;;  %v3051_v11 = vadd.f32 %v3050_v7, %v3049_v5  ;;  %v3138_v12 = vpop.f32.mrb[51].mxu1 }
 0x15d   :  { %v3139_v13 = vadd.f32 %v3138_v12, %v3137_v9 }
 0x15e   :  { %v1485_v14 = vadd.f32 %v3051_v11, %v4518_v28  ;;  %v4691_v16 = vadd.f32 %v3136_v8, %v1482_v10 }
 0x160   :  { %v4693_v18 = vadd.f32 %v3139_v13, %v1485_v14  ;;  %v3052_v21 = vpop.f32.mrb[52].mxu0 }
 0x161   :  { %v3053_v23 = vpop.f32.mrb[53].mxu0  ;;  %v3140_v27 = vpop.f32.mrb[52].mxu1 }
 0x162   :  { %v3054_v29 = vadd.f32 %v3053_v23, %v3052_v21  ;;  %v3055_v30 = vpop.f32.mrb[54].mxu0  ;;  %v3141_v31 = vpop.f32.mrb[53].mxu1 }
 0x163   :  { %v3056_v32 = vpop.f32.mrb[55].mxu0  ;;  %v3142_v33 = vadd.f32 %v3141_v31, %v3140_v27  ;;  %v3143_v34 = vpop.f32.mrb[54].mxu1 }
 0x164   :  { %v1490_v26 = vadd.f32 %v3054_v29, %v4533_v44  ;;  %v3057_v35 = vadd.f32 %v3056_v32, %v3055_v30  ;;  %v3144_v36 = vpop.f32.mrb[55].mxu1 }
 0x165   :  { %v3145_v38 = vadd.f32 %v3144_v36, %v3143_v34 }
 0x166   :  { %v1493_v28 = vadd.f32 %v3057_v35, %v4535_v25  ;;  %v4697_v41 = vadd.f32 %v3142_v33, %v1490_v26 }
 0x168   :  { %v4699_v42 = vadd.f32 %v3145_v38, %v1493_v28  ;;  %v3058_v43 = vpop.f32.mrb[56].mxu0 }
 0x169   :  { %v3059_v47 = vpop.f32.mrb[57].mxu0  ;;  %v3146_v49 = vpop.f32.mrb[56].mxu1 }
 0x16a   :  { %v3060_v50 = vadd.f32 %v3059_v47, %v3058_v43  ;;  %v3061_v51 = vpop.f32.mrb[58].mxu0  ;;  %v3147_v52 = vpop.f32.mrb[57].mxu1 }
 0x16b   :  { %v3062_v53 = vpop.f32.mrb[59].mxu0  ;;  %v3148_v54 = vadd.f32 %v3147_v52, %v3146_v49  ;;  %v3149_v55 = vpop.f32.mrb[58].mxu1 }
 0x16c   :  { %v1498_v44 = vadd.f32 %v3060_v50, %v4550_v61  ;;  %v3063_v57 = vadd.f32 %v3062_v53, %v3061_v51  ;;  %v3150_v59 = vpop.f32.mrb[59].mxu1 }
 0x16d   :  { %v3151_v60 = vadd.f32 %v3150_v59, %v3149_v55 }
 0x16e   :  { %v1501_v25 = vadd.f32 %v3063_v57, %v4552_v63  ;;  %v4703_v62 = vadd.f32 %v3148_v54, %v1498_v44 }
 0x170   :  { %v4705_v2 = vadd.f32 %v3151_v60, %v1501_v25  ;;  %v3064_v5 = vpop.f32.mrb[60].mxu0 }
 0x171   :  { %v3065_v6 = vpop.f32.mrb[61].mxu0  ;;  %v3152_v7 = vpop.f32.mrb[60].mxu1 }
 0x172   :  { %v3066_v8 = vadd.f32 %v3065_v6, %v3064_v5  ;;  %v3067_v9 = vpop.f32.mrb[62].mxu0  ;;  %v3153_v10 = vpop.f32.mrb[61].mxu1 }
 0x173   :  { %v3068_v11 = vpop.f32.mrb[63].mxu0  ;;  %v3154_v12 = vadd.f32 %v3153_v10, %v3152_v7  ;;  %v3155_v13 = vpop.f32.mrb[62].mxu1 }
 0x174   :  { %v1506_v61 = vadd.f32 %v3066_v8, %v4567_v15  ;;  %v3069_v14 = vadd.f32 %v3068_v11, %v3067_v9  ;;  %v3156_v21 = vpop.f32.mrb[63].mxu1 }
 0x175   :  { %v3157_v23 = vadd.f32 %v3156_v21, %v3155_v13 }
 0x176   :  { %v1509_v63 = vadd.f32 %v3069_v14, %v4575_v19  ;;  %v4709_v27 = vadd.f32 %v3154_v12, %v1506_v61 }
 0x178   :  { %v4711_v29 = vadd.f32 %v3157_v23, %v1509_v63  ;;  %v3070_v30 = vpop.f32.mrb[64].mxu0 }
 0x179   :  { %v3071_v31 = vpop.f32.mrb[65].mxu0  ;;  %v3158_v32 = vpop.f32.mrb[64].mxu1 }
 0x17a   :  { %v3072_v33 = vadd.f32 %v3071_v31, %v3070_v30  ;;  %v3073_v34 = vpop.f32.mrb[66].mxu0  ;;  %v3159_v26 = vpop.f32.mrb[65].mxu1 }
 0x17b   :  { %v3074_v35 = vpop.f32.mrb[67].mxu0  ;;  %v3160_v36 = vadd.f32 %v3159_v26, %v3158_v32  ;;  %v3161_v38 = vpop.f32.mrb[66].mxu1 }
 0x17c   :  { %v1514_v15 = vadd.f32 %v3072_v33, %v4596_v40  ;;  %v3075_v28 = vadd.f32 %v3074_v35, %v3073_v34  ;;  %v3162_v43 = vpop.f32.mrb[67].mxu1 }
 0x17d   :  { %v3163_v47 = vadd.f32 %v3162_v43, %v3161_v38 }
 0x17e   :  { %v1517_v19 = vadd.f32 %v3075_v28, %v4604_v45  ;;  %v4715_v49 = vadd.f32 %v3160_v36, %v1514_v15 }
 0x180   :  { %v4717_v50 = vadd.f32 %v3163_v47, %v1517_v19  ;;  %v3076_v51 = vpop.f32.mrb[68].mxu0 }
 0x181   :  { %v3077_v52 = vpop.f32.mrb[69].mxu0  ;;  %v3164_v53 = vpop.f32.mrb[68].mxu1 }
 0x182   :  { %v3078_v54 = vadd.f32 %v3077_v52, %v3076_v51  ;;  %v3079_v55 = vpop.f32.mrb[70].mxu0  ;;  %v3165_v44 = vpop.f32.mrb[69].mxu1 }
 0x183   :  { %v3080_v57 = vpop.f32.mrb[71].mxu0  ;;  %v3166_v59 = vadd.f32 %v3165_v44, %v3164_v53  ;;  %v3167_v60 = vpop.f32.mrb[70].mxu1 }
 0x184   :  { %v1522_v40 = vadd.f32 %v3078_v54, %v4625_v1  ;;  %v3081_v25 = vadd.f32 %v3080_v57, %v3079_v55  ;;  %v3168_v5 = vpop.f32.mrb[71].mxu1 }
 0x185   :  { %v3169_v6 = vadd.f32 %v3168_v5, %v3167_v60 }
 0x186   :  { %v1525_v45 = vadd.f32 %v3081_v25, %v4630_v4  ;;  %v4721_v7 = vadd.f32 %v3166_v59, %v1522_v40 }
 0x188   :  { %v4723_v8 = vadd.f32 %v3169_v6, %v1525_v45  ;;  %v3082_v9 = vpop.f32.mrb[72].mxu0 }
 0x189   :  { %v3083_v10 = vpop.f32.mrb[73].mxu0  ;;  %v3170_v11 = vpop.f32.mrb[72].mxu1 }
 0x18a   :  { %v3084_v12 = vadd.f32 %v3083_v10, %v3082_v9  ;;  %v3085_v13 = vpop.f32.mrb[74].mxu0  ;;  %v3171_v61 = vpop.f32.mrb[73].mxu1 }
 0x18b   :  { %v3086_v14 = vpop.f32.mrb[75].mxu0  ;;  %v3172_v21 = vadd.f32 %v3171_v61, %v3170_v11  ;;  %v3173_v23 = vpop.f32.mrb[74].mxu1 }
 0x18c   :  { %v1530_v1 = vadd.f32 %v3084_v12, %v4645_v22  ;;  %v3087_v63 = vadd.f32 %v3086_v14, %v3085_v13  ;;  %v3174_v30 = vpop.f32.mrb[75].mxu1 }
 0x18d   :  { %v3175_v31 = vadd.f32 %v3174_v30, %v3173_v23 }
 0x18e   :  { %v1533_v4 = vadd.f32 %v3087_v63, %v4647_v24  ;;  %v4727_v32 = vadd.f32 %v3172_v21, %v1530_v1 }
 0x190   :  { %v4729_v33 = vadd.f32 %v3175_v31, %v1533_v4  ;;  %v3088_v34 = vpop.f32.mrb[76].mxu0 }
 0x191   :  { %v3089_v26 = vpop.f32.mrb[77].mxu0  ;;  %v3176_v35 = vpop.f32.mrb[76].mxu1 }
 0x192   :  { %v3090_v36 = vadd.f32 %v3089_v26, %v3088_v34  ;;  %v3091_v38 = vpop.f32.mrb[78].mxu0  ;;  %v3177_v15 = vpop.f32.mrb[77].mxu1 }
 0x193   :  { %v3092_v28 = vpop.f32.mrb[79].mxu0  ;;  %v3178_v43 = vadd.f32 %v3177_v15, %v3176_v35  ;;  %v3179_v47 = vpop.f32.mrb[78].mxu1 }
 0x194   :  { %v1538_v22 = vadd.f32 %v3090_v36, %v4662_v46  ;;  %v3093_v19 = vadd.f32 %v3092_v28, %v3091_v38  ;;  %v3180_v51 = vpop.f32.mrb[79].mxu1 }
 0x195   :  { %v3181_v52 = vadd.f32 %v3180_v51, %v3179_v47 }
 0x196   :  { %v1541_v24 = vadd.f32 %v3093_v19, %v4664_v48  ;;  %v4733_v53 = vadd.f32 %v3178_v43, %v1538_v22 }
 0x198   :  { %v4735_v54 = vadd.f32 %v3181_v52, %v1541_v24  ;;  %v3094_v55 = vpop.f32.mrb[80].mxu0 }
 0x199   :  { %v3095_v44 = vpop.f32.mrb[81].mxu0  ;;  %v3182_v57 = vpop.f32.mrb[80].mxu1 }
 0x19a   :  { %v3096_v59 = vadd.f32 %v3095_v44, %v3094_v55  ;;  %v3097_v60 = vpop.f32.mrb[82].mxu0  ;;  %v3183_v40 = vpop.f32.mrb[81].mxu1 }
 0x19b   :  { %v3098_v25 = vpop.f32.mrb[83].mxu0  ;;  %v3184_v5 = vadd.f32 %v3183_v40, %v3182_v57  ;;  %v3185_v6 = vpop.f32.mrb[82].mxu1 }
 0x19c   :  { %v1546_v46 = vadd.f32 %v3096_v59, %v4673_v0  ;;  %v3099_v45 = vadd.f32 %v3098_v25, %v3097_v60  ;;  %v3186_v9 = vpop.f32.mrb[83].mxu1 }
 0x19d   :  { %v3187_v10 = vadd.f32 %v3186_v9, %v3185_v6 }
 0x19e   :  { %v1549_v48 = vadd.f32 %v3099_v45, %v4675_v3  ;;  %v4739_v11 = vadd.f32 %v3184_v5, %v1546_v46 }
 0x1a0   :  { %v4741_v12 = vadd.f32 %v3187_v10, %v1549_v48  ;;  %v3100_v13 = vpop.f32.mrb[84].mxu0 }
 0x1a1   :  { %v3101_v61 = vpop.f32.mrb[85].mxu0  ;;  %v3188_v14 = vpop.f32.mrb[84].mxu1 }
 0x1a2   :  { %v3102_v21 = vadd.f32 %v3101_v61, %v3100_v13  ;;  %v3103_v23 = vpop.f32.mrb[86].mxu0  ;;  %v3189_v1 = vpop.f32.mrb[85].mxu1 }
 0x1a3   :  { %v3104_v63 = vpop.f32.mrb[87].mxu0  ;;  %v3190_v30 = vadd.f32 %v3189_v1, %v3188_v14  ;;  %v3191_v31 = vpop.f32.mrb[86].mxu1 }
 0x1a4   :  { %v1554_v0 = vadd.f32 %v3102_v21, %v4677_v17  ;;  %v3105_v4 = vadd.f32 %v3104_v63, %v3103_v23  ;;  %v3192_v34 = vpop.f32.mrb[87].mxu1 }
 0x1a5   :  { %v3193_v26 = vadd.f32 %v3192_v34, %v3191_v31 }
 0x1a6   :  { %v1557_v3 = vadd.f32 %v3105_v4, %v4679_v20  ;;  %v4745_v35 = vadd.f32 %v3190_v30, %v1554_v0 }
 0x1a8   :  { %v4747_v36 = vadd.f32 %v3193_v26, %v1557_v3  ;;  %v3106_v38 = vpop.f32.mrb[88].mxu0 }
 0x1a9   :  { %v3107_v15 = vpop.f32.mrb[89].mxu0  ;;  %v3194_v28 = vpop.f32.mrb[88].mxu1 }
 0x1aa   :  { %v3108_v43 = vadd.f32 %v3107_v15, %v3106_v38  ;;  %v3109_v47 = vpop.f32.mrb[90].mxu0  ;;  %v3195_v22 = vpop.f32.mrb[89].mxu1 }
 0x1ab   :  { %v3110_v19 = vpop.f32.mrb[91].mxu0  ;;  %v3196_v51 = vadd.f32 %v3195_v22, %v3194_v28  ;;  %v3197_v52 = vpop.f32.mrb[90].mxu1 }
 0x1ac   :  { %v1562_v17 = vadd.f32 %v3108_v43, %v4681_v37  ;;  %v3111_v24 = vadd.f32 %v3110_v19, %v3109_v47  ;;  %v3198_v55 = vpop.f32.mrb[91].mxu1 }
 0x1ad   :  { %v3199_v44 = vadd.f32 %v3198_v55, %v3197_v52 }
 0x1ae   :  { %v1565_v20 = vadd.f32 %v3111_v24, %v4683_v39  ;;  %v4751_v57 = vadd.f32 %v3196_v51, %v1562_v17 }
 0x1b0   :  { %v4753_v59 = vadd.f32 %v3199_v44, %v1565_v20  ;;  %v3112_v60 = vpop.f32.mrb[92].mxu0 }
 0x1b1   :  { %v3113_v40 = vpop.f32.mrb[93].mxu0  ;;  %v3200_v25 = vpop.f32.mrb[92].mxu1 }
 0x1b2   :  { %v3114_v5 = vadd.f32 %v3113_v40, %v3112_v60  ;;  %v3115_v6 = vpop.f32.mrb[94].mxu0  ;;  %v3201_v46 = vpop.f32.mrb[93].mxu1 }
 0x1b3   :  { %v3116_v45 = vpop.f32.mrb[95].mxu0  ;;  %v3202_v9 = vadd.f32 %v3201_v46, %v3200_v25  ;;  %v3203_v10 = vpop.f32.mrb[94].mxu1 }
 0x1b4   :  { %v1570_v37 = vadd.f32 %v3114_v5, %v4685_v56  ;;  %v3117_v48 = vadd.f32 %v3116_v45, %v3115_v6  ;;  %v3204_v13 = vpop.f32.mrb[95].mxu1 }
 0x1b5   :  { %v3205_v61 = vadd.f32 %v3204_v13, %v3203_v10 }
 0x1b6   :  { %v1573_v39 = vadd.f32 %v3117_v48, %v4687_v58  ;;  %v4757_v14 = vadd.f32 %v3202_v9, %v1570_v37 }
 0x1b8   :  { %v4759_v21 = vadd.f32 %v3205_v61, %v1573_v39  ;;  %v3222_v23 = vpop.f32.mrb[96].mxu0 }
 0x1b9   :  { %v3223_v1 = vpop.f32.mrb[97].mxu0  ;;  %v1868_v63 = vpop.f32.mrb[96].mxu1 }
 0x1ba   :  { %v3224_v30 = vadd.f32 %v3223_v1, %v3222_v23  ;;  %v3225_v31 = vpop.f32.mrb[98].mxu0  ;;  %v1870_v0 = vpop.f32.mrb[97].mxu1 }
 0x1bb   :  { %v3226_v4 = vpop.f32.mrb[99].mxu0  ;;  %v1871_v34 = vpop.f32.mrb[98].mxu1 }
 0x1bc   :  { %v3227_v26 = vadd.f32 %v3226_v4, %v3225_v31  ;;  %v1740_v56 = vadd.f32 %v3224_v30, %v4691_v16  ;;  %v1873_v3 = vpop.f32.mrb[99].mxu1 }
 0x1be   :  { %v4762_v38 = vadd.f32 %v1868_v63, %v1740_v56  ;;  %v1743_v58 = vadd.f32 %v3227_v26, %v4693_v18 }
 0x1c0   :  { %v4765_v15 = vadd.f32 %v1871_v34, %v1743_v58  ;;  %v3228_v28 = vpop.f32.mrb[100].mxu0  ;;  %v1964_v43 = vsel %vm1963_vm1, %v4762_v38, 0.0 }
 0x1c1   :  { %v3229_v47 = vpop.f32.mrb[101].mxu0  ;;  %1965 = vadd.xlane.f32.xlu0 %v1964_v43  ;;  %v1876_v22 = vpop.f32.mrb[100].mxu1 }
 0x1c2   :  { %v3230_v19 = vadd.f32 %v3229_v47, %v3228_v28  ;;  %v3231_v51 = vpop.f32.mrb[102].mxu0  ;;  %v1878_v52 = vpop.f32.mrb[101].mxu1  ;;  %v1967_v18 = vsel %vm1963_vm1, %v4765_v15, 0.0 }
 0x1c3   :  { %v3232_v17 = vpop.f32.mrb[103].mxu0  ;;  %v1879_v16 = vpop.f32.mrb[102].mxu1 }
 0x1c4   :  { %v3233_v24 = vadd.f32 %v3232_v17, %v3231_v51  ;;  %v1748_v55 = vadd.f32 %v3230_v19, %v4697_v41  ;;  %v1881_v44 = vpop.f32.mrb[103].mxu1 }
 0x1c5   :  { %1968 = vadd.xlane.f32.xlu0 %v1967_v18 }
 0x1c6   :  { %v4772_v20 = vadd.f32 %v1876_v22, %v1748_v55  ;;  %v1751_v60 = vadd.f32 %v3233_v24, %v4699_v42 }
 0x1c8   :  { %v4775_v40 = vadd.f32 %v1879_v16, %v1751_v60  ;;  %v3234_v25 = vpop.f32.mrb[104].mxu0  ;;  %v1970_v5 = vsel %vm1963_vm1, %v4772_v20, 0.0 }
 0x1c9   :  { %v3235_v6 = vpop.f32.mrb[105].mxu0  ;;  %1971 = vadd.xlane.f32.xlu1 %v1970_v5  ;;  %v1884_v46 = vpop.f32.mrb[104].mxu1 }
 0x1ca   :  { %v3236_v45 = vadd.f32 %v3235_v6, %v3234_v25  ;;  %v3237_v41 = vpop.f32.mrb[106].mxu0  ;;  %v1886_v9 = vpop.f32.mrb[105].mxu1  ;;  %v1973_v42 = vsel %vm1963_vm1, %v4775_v40, 0.0 }
 0x1cb   :  { %v3238_v10 = vpop.f32.mrb[107].mxu0  ;;  %v1887_v37 = vpop.f32.mrb[106].mxu1 }
 0x1cc   :  { %v3239_v48 = vadd.f32 %v3238_v10, %v3237_v41  ;;  %v1756_v13 = vadd.f32 %v3236_v45, %v4703_v62  ;;  %v1889_v61 = vpop.f32.mrb[107].mxu1 }
 0x1cd   :  { %1974 = vadd.xlane.f32.xlu1 %v1973_v42 }
 0x1ce   :  { %v4782_v39 = vadd.f32 %v1884_v46, %v1756_v13  ;;  %v1759_v23 = vadd.f32 %v3239_v48, %v4705_v2 }
 0x1d0   :  { %v4785_v1 = vadd.f32 %v1887_v37, %v1759_v23  ;;  %v3240_v63 = vpop.f32.mrb[108].mxu0  ;;  %v1976_v30 = vsel %vm1963_vm1, %v4782_v39, 0.0 }
 0x1d1   :  { %v3241_v31 = vpop.f32.mrb[109].mxu0  ;;  %1977 = vadd.xlane.f32.xlu0 %v1976_v30  ;;  %v1892_v0 = vpop.f32.mrb[108].mxu1 }
 0x1d2   :  { %v3242_v4 = vadd.f32 %v3241_v31, %v3240_v63  ;;  %v3243_v62 = vpop.f32.mrb[110].mxu0  ;;  %v1979_v34 = vsel %vm1963_vm1, %v4785_v1, 0.0  ;;  %v1894_v26 = vpop.f32.mrb[109].mxu1 }
 0x1d3   :  { %v3244_v56 = vpop.f32.mrb[111].mxu0  ;;  %1980 = vadd.xlane.f32.xlu1 %v1979_v34  ;;  %v1895_v3 = vpop.f32.mrb[110].mxu1 }
 0x1d4   :  { %v3245_v58 = vadd.f32 %v3244_v56, %v3243_v62  ;;  %v1764_v2 = vadd.f32 %v3242_v4, %v4709_v27  ;;  %v1897_v28 = vpop.f32.mrb[111].mxu1 }
 0x1d6   :  { %v4792_v43 = vadd.f32 %v1892_v0, %v1764_v2  ;;  %v1767_v47 = vadd.f32 %v3245_v58, %v4711_v29 }
 0x1d8   :  { %v4795_v22 = vadd.f32 %v1895_v3, %v1767_v47  ;;  %v3246_v19 = vpop.f32.mrb[112].mxu0  ;;  %v1982_v51 = vsel %vm1963_vm1, %v4792_v43, 0.0 }
 0x1d9   :  { %v3247_v52 = vpop.f32.mrb[113].mxu0  ;;  %1983 = vadd.xlane.f32.xlu0 %v1982_v51  ;;  %v1900_v17 = vpop.f32.mrb[112].mxu1 }
 0x1da   :  { %v3248_v16 = vadd.f32 %v3247_v52, %v3246_v19  ;;  %v3249_v24 = vpop.f32.mrb[114].mxu0  ;;  %v1985_v55 = vsel %vm1963_vm1, %v4795_v22, 0.0  ;;  %v1902_v27 = vpop.f32.mrb[113].mxu1 }
 0x1db   :  { %v3250_v18 = vpop.f32.mrb[115].mxu0  ;;  %1986 = vadd.xlane.f32.xlu1 %v1985_v55  ;;  %v1903_v44 = vpop.f32.mrb[114].mxu1 }
 0x1dc   :  { %v3251_v60 = vadd.f32 %v3250_v18, %v3249_v24  ;;  %v1772_v29 = vadd.f32 %v3248_v16, %v4715_v49  ;;  %v1905_v25 = vpop.f32.mrb[115].mxu1 }
 0x1de   :  { %v4802_v5 = vadd.f32 %v1900_v17, %v1772_v29  ;;  %v1775_v6 = vadd.f32 %v3251_v60, %v4717_v50 }
 0x1e0   :  { %v4805_v46 = vadd.f32 %v1903_v44, %v1775_v6  ;;  %v3252_v45 = vpop.f32.mrb[116].mxu0  ;;  %v1988_v41 = vsel %vm1963_vm1, %v4802_v5, 0.0 }
 0x1e1   :  { %v3253_v9 = vpop.f32.mrb[117].mxu0  ;;  %1989 = vadd.xlane.f32.xlu0 %v1988_v41  ;;  %v1908_v10 = vpop.f32.mrb[116].mxu1 }
 0x1e2   :  { %v3254_v37 = vadd.f32 %v3253_v9, %v3252_v45  ;;  %v3255_v48 = vpop.f32.mrb[118].mxu0  ;;  %v1991_v13 = vsel %vm1963_vm1, %v4805_v46, 0.0  ;;  %v1910_v49 = vpop.f32.mrb[117].mxu1 }
 0x1e3   :  { %v3256_v42 = vpop.f32.mrb[119].mxu0  ;;  %1992 = vadd.xlane.f32.xlu1 %v1991_v13  ;;  %v1911_v61 = vpop.f32.mrb[118].mxu1 }
 0x1e4   :  { %v3257_v23 = vadd.f32 %v3256_v42, %v3255_v48  ;;  %v1780_v50 = vadd.f32 %v3254_v37, %v4721_v7  ;;  %v1913_v63 = vpop.f32.mrb[119].mxu1 }
 0x1e6   :  { %v4812_v30 = vadd.f32 %v1908_v10, %v1780_v50  ;;  %v1783_v31 = vadd.f32 %v3257_v23, %v4723_v8 }
 0x1e8   :  { %v4815_v0 = vadd.f32 %v1911_v61, %v1783_v31  ;;  %v3258_v4 = vpop.f32.mrb[120].mxu0  ;;  %v1994_v62 = vsel %vm1963_vm1, %v4812_v30, 0.0 }
 0x1e9   :  { %v3259_v34 = vpop.f32.mrb[121].mxu0  ;;  %1995 = vadd.xlane.f32.xlu0 %v1994_v62  ;;  %v1916_v26 = vpop.f32.mrb[120].mxu1 }
 0x1ea   :  { %v3260_v56 = vadd.f32 %v3259_v34, %v3258_v4  ;;  %v3261_v3 = vpop.f32.mrb[122].mxu0  ;;  %v1997_v58 = vsel %vm1963_vm1, %v4815_v0, 0.0  ;;  %v1918_v7 = vpop.f32.mrb[121].mxu1 }
 0x1eb   :  { %v3262_v2 = vpop.f32.mrb[123].mxu0  ;;  %1998 = vadd.xlane.f32.xlu1 %v1997_v58  ;;  %v1919_v28 = vpop.f32.mrb[122].mxu1 }
 0x1ec   :  { %v3263_v47 = vadd.f32 %v3262_v2, %v3261_v3  ;;  %v1788_v8 = vadd.f32 %v3260_v56, %v4727_v32  ;;  %v1921_v19 = vpop.f32.mrb[123].mxu1 }
 0x1ee   :  { %v4822_v51 = vadd.f32 %v1916_v26, %v1788_v8  ;;  %v1791_v52 = vadd.f32 %v3263_v47, %v4729_v33 }
 0x1f0   :  { %v4825_v17 = vadd.f32 %v1919_v28, %v1791_v52  ;;  %v3264_v16 = vpop.f32.mrb[124].mxu0  ;;  %v2000_v24 = vsel %vm1963_vm1, %v4822_v51, 0.0 }
 0x1f1   :  { %v3265_v55 = vpop.f32.mrb[125].mxu0  ;;  %2001 = vadd.xlane.f32.xlu0 %v2000_v24  ;;  %v1924_v27 = vpop.f32.mrb[124].mxu1 }
 0x1f2   :  { %v3266_v18 = vadd.f32 %v3265_v55, %v3264_v16  ;;  %v3267_v44 = vpop.f32.mrb[126].mxu0  ;;  %v2003_v60 = vsel %vm1963_vm1, %v4825_v17, 0.0  ;;  %v1926_v32 = vpop.f32.mrb[125].mxu1 }
 0x1f3   :  { %v3268_v29 = vpop.f32.mrb[127].mxu0  ;;  %2004 = vadd.xlane.f32.xlu1 %v2003_v60  ;;  %v1927_v25 = vpop.f32.mrb[126].mxu1 }
 0x1f4   :  { %v3269_v6 = vadd.f32 %v3268_v29, %v3267_v44  ;;  %v1796_v33 = vadd.f32 %v3266_v18, %v4733_v53  ;;  %v1929_v45 = vpop.f32.mrb[127].mxu1 }
 0x1f6   :  { %v4832_v41 = vadd.f32 %v1924_v27, %v1796_v33  ;;  %v1799_v9 = vadd.f32 %v3269_v6, %v4735_v54 }
 0x1f8   :  { %v4835_v10 = vadd.f32 %v1927_v25, %v1799_v9  ;;  %v3270_v37 = vpop.f32.mrb[128].mxu0  ;;  %v2006_v48 = vsel %vm1963_vm1, %v4832_v41, 0.0 }
 0x1f9   :  { %v3271_v13 = vpop.f32.mrb[129].mxu0  ;;  %2007 = vadd.xlane.f32.xlu0 %v2006_v48  ;;  %v1932_v49 = vpop.f32.mrb[128].mxu1 }
 0x1fa   :  { %v3272_v42 = vadd.f32 %v3271_v13, %v3270_v37  ;;  %v3273_v61 = vpop.f32.mrb[130].mxu0  ;;  %v2009_v23 = vsel %vm1963_vm1, %v4835_v10, 0.0  ;;  %v1934_v53 = vpop.f32.mrb[129].mxu1 }
 0x1fb   :  { %v3274_v50 = vpop.f32.mrb[131].mxu0  ;;  %2010 = vadd.xlane.f32.xlu1 %v2009_v23  ;;  %v1935_v63 = vpop.f32.mrb[130].mxu1 }
 0x1fc   :  { %v3275_v31 = vadd.f32 %v3274_v50, %v3273_v61  ;;  %v1804_v54 = vadd.f32 %v3272_v42, %v4739_v11  ;;  %v1937_v4 = vpop.f32.mrb[131].mxu1 }
 0x1fe   :  { %v4842_v62 = vadd.f32 %v1932_v49, %v1804_v54  ;;  %v1807_v34 = vadd.f32 %v3275_v31, %v4741_v12 }
 0x200   :  { %v4845_v26 = vadd.f32 %v1935_v63, %v1807_v34  ;;  %v3276_v56 = vpop.f32.mrb[132].mxu0  ;;  %v2012_v3 = vsel %vm1963_vm1, %v4842_v62, 0.0 }
 0x201   :  { %v3277_v58 = vpop.f32.mrb[133].mxu0  ;;  %2013 = vadd.xlane.f32.xlu0 %v2012_v3  ;;  %v1940_v7 = vpop.f32.mrb[132].mxu1 }
 0x202   :  { %v3278_v2 = vadd.f32 %v3277_v58, %v3276_v56  ;;  %v3279_v28 = vpop.f32.mrb[134].mxu0  ;;  %v2015_v47 = vsel %vm1963_vm1, %v4845_v26, 0.0  ;;  %v1942_v11 = vpop.f32.mrb[133].mxu1 }
 0x203   :  { %v3280_v8 = vpop.f32.mrb[135].mxu0  ;;  %2016 = vadd.xlane.f32.xlu1 %v2015_v47  ;;  %v1943_v19 = vpop.f32.mrb[134].mxu1 }
 0x204   :  { %v3281_v52 = vadd.f32 %v3280_v8, %v3279_v28  ;;  %v1812_v12 = vadd.f32 %v3278_v2, %v4745_v35  ;;  %v1945_v16 = vpop.f32.mrb[135].mxu1  ;;  %v2455_v28 = vld [vmem:[%s5522_s3 + $0x50] sm:$0xff]  ;;  %v4885_v47 = vpop.permute.xlu0 %2476 }
 0x205   :  { %v4887_v11 = vpop.permute.xlu1 %2471 }
 0x206   :  { %v4852_v24 = vadd.f32 %v1940_v7, %v1812_v12  ;;  %v1815_v55 = vadd.f32 %v3281_v52, %v4747_v36 }
 0x208   :  { %v4855_v27 = vadd.f32 %v1943_v19, %v1815_v55  ;;  %v3282_v18 = vpop.f32.mrb[136].mxu0  ;;  %v2018_v44 = vsel %vm1963_vm1, %v4852_v24, 0.0 }
 0x209   :  { %v3283_v60 = vpop.f32.mrb[137].mxu0  ;;  %2019 = vadd.xlane.f32.xlu0 %v2018_v44  ;;  %v1948_v32 = vpop.f32.mrb[136].mxu1 }
 0x20a   :  { %v3284_v29 = vadd.f32 %v3283_v60, %v3282_v18  ;;  %v3285_v25 = vpop.f32.mrb[138].mxu0  ;;  %v2021_v6 = vsel %vm1963_vm1, %v4855_v27, 0.0  ;;  %v1950_v35 = vpop.f32.mrb[137].mxu1 }
 0x20b   :  { %v3286_v33 = vpop.f32.mrb[139].mxu0  ;;  %2022 = vadd.xlane.f32.xlu1 %v2021_v6  ;;  %v1951_v45 = vpop.f32.mrb[138].mxu1 }
 0x20c   :  { %v3287_v9 = vadd.f32 %v3286_v33, %v3285_v25  ;;  %v1820_v36 = vadd.f32 %v3284_v29, %v4751_v57  ;;  %v1953_v37 = vpop.f32.mrb[139].mxu1  ;;  %v4891_v8 = vpop.permute.xlu1 %2481 }
 0x20e   :  { %v4862_v48 = vadd.f32 %v1948_v32, %v1820_v36  ;;  %v1823_v13 = vadd.f32 %v3287_v9, %v4753_v59 }
 0x210   :  { %v4865_v49 = vadd.f32 %v1951_v45, %v1823_v13  ;;  %v3288_v42 = vpop.f32.mrb[140].mxu0  ;;  %v2024_v61 = vsel %vm1963_vm1, %v4862_v48, 0.0  ;;  %v4895_v52 = vpop.permute.xlu1 %2491 }
 0x211   :  { %v3289_v23 = vpop.f32.mrb[141].mxu0  ;;  %2025 = vadd.xlane.f32.xlu0 %v2024_v61  ;;  %v1956_v53 = vpop.f32.mrb[140].mxu1 }
 0x212   :  { %v3290_v50 = vadd.f32 %v3289_v23, %v3288_v42  ;;  %v3291_v63 = vpop.f32.mrb[142].mxu0  ;;  %v2027_v31 = vsel %vm1963_vm1, %v4865_v49, 0.0  ;;  %v1958_v57 = vpop.f32.mrb[141].mxu1 }
 0x213   :  { %v3292_v54 = vpop.f32.mrb[143].mxu0  ;;  %2028 = vadd.xlane.f32.xlu1 %v2027_v31  ;;  %v1959_v4 = vpop.f32.mrb[142].mxu1 }
 0x214   :  { %v3293_v34 = vadd.f32 %v3292_v54, %v3291_v63  ;;  %v1828_v59 = vadd.f32 %v3290_v50, %v4757_v14  ;;  %v1961_v56 = vpop.f32.mrb[143].mxu1  ;;  %v2454_v14 = vld [vmem:[%s5522_s3 + $0x48] sm:$0xff]  ;;  %v4901_v55 = vpop.permute.xlu1 %2501 }
 0x216   :  { %v4872_v3 = vadd.f32 %v1956_v53, %v1828_v59  ;;  %v1831_v58 = vadd.f32 %v3293_v34, %v4759_v21  ;;  %v4889_v21 = vpop.permute.xlu0 %2486 }
 0x218   :  { %v4875_v7 = vadd.f32 %v1959_v4, %v1831_v58  ;;  %v2030_v2 = vsel %vm1963_vm1, %v4872_v3, 0.0  ;;  %v4910_v32 = vpop.permute.xlu1 %2511 }
 0x219   :  { %2031 = vadd.xlane.f32.xlu0 %v2030_v2 }
 0x21a   :  { %v4893_v19 = vpop.permute.xlu0 %2496  ;;  %v2033_v12 = vsel %vm1963_vm1, %v4875_v7, 0.0 }
 0x21e   :  { %v4899_v16 = vpop.permute.xlu0 %2506 }
 0x224   :  { %2521 = vperm.xlu1 %3295, %v2455_v28  }
 0x22f   :  { %2516 = vperm.xlu0 %3296, %v2454_v14  }
 0x248   :  { %2034 = vadd.xlane.f32.xlu1 %v2033_v12 }
 0x24e   :  { %v1966_v18 = vpop.xlane.xlu0 %1965 }
 0x24f   :  { %v2037_v44 = vmul.f32 0.020408163, %v1966_v18 }
 0x251   :  { %v4904_v60 = vsub.f32 %v4762_v38, %v2037_v44  ;;  %2638 = vst.msk [vmem:[%s5523_s5] sm:$0xff] %vm2637_vm2, %v2037_v44 }
 0x252   :  { %v1969_v29 = vpop.xlane.xlu0 %1968 }
 0x253   :  { %v2038_v25 = vmul.f32 0.020408163, %v1969_v29  ;;  %v2085_v6 = vmul.f32 %v4904_v60, %v4904_v60 }
 0x255   :  { %v4915_v35 = vsub.f32 %v4765_v15, %v2038_v25  ;;  %2639 = vst.msk [vmem:[%s5523_s5 + $0x8] sm:$0xff] %vm2637_vm2, %v2038_v25  ;;  %v2109_v38 = vsel %vm1963_vm1, %v2085_v6, 0.0 }
 0x256   :  { %v1972_v33 = vpop.xlane.xlu1 %1971  ;;  %2110 = vadd.xlane.f32.xlu0 %v2109_v38 }
 0x257   :  { %v2039_v45 = vmul.f32 0.020408163, %v1972_v33  ;;  %v2086_v9 = vmul.f32 %v4915_v35, %v4915_v35 }
 0x259   :  { %v4925_v36 = vsub.f32 %v4772_v20, %v2039_v45  ;;  %2640 = vst.msk [vmem:[%s5523_s5 + $0x10] sm:$0xff] %vm2637_vm2, %v2039_v45  ;;  %v2112_v15 = vsel %vm1963_vm1, %v2086_v9, 0.0 }
 0x25a   :  { %v1975_v37 = vpop.xlane.xlu1 %1974  ;;  %2113 = vadd.xlane.f32.xlu1 %v2112_v15 }
 0x25b   :  { %v2040_v13 = vmul.f32 0.020408163, %v1975_v37  ;;  %v2087_v42 = vmul.f32 %v4925_v36, %v4925_v36 }
 0x25d   :  { %v4935_v61 = vsub.f32 %v4775_v40, %v2040_v13  ;;  %2641 = vst.msk [vmem:[%s5523_s5 + $0x18] sm:$0xff] %vm2637_vm2, %v2040_v13  ;;  %v2115_v20 = vsel %vm1963_vm1, %v2087_v42, 0.0 }
 0x25e   :  { %2116 = vadd.xlane.f32.xlu0 %v2115_v20  ;;  %v1978_v23 = vpop.xlane.xlu0 %1977 }
 0x25f   :  { %v2041_v53 = vmul.f32 0.020408163, %v1978_v23  ;;  %v2088_v50 = vmul.f32 %v4935_v61, %v4935_v61 }
 0x260   :  { %v1981_v63 = vpop.xlane.xlu1 %1980 }
 0x261   :  { %v4945_v31 = vsub.f32 %v4782_v39, %v2041_v53  ;;  %2642 = vst.msk [vmem:[%s5523_s5 + $0x20] sm:$0xff] %vm2637_vm2, %v2041_v53  ;;  %v2042_v40 = vmul.f32 0.020408163, %v1981_v63  ;;  %v2118_v57 = vsel %vm1963_vm1, %v2088_v50, 0.0 }
 0x262   :  { %2119 = vadd.xlane.f32.xlu1 %v2118_v57 }
 0x263   :  { %v4953_v54 = vsub.f32 %v4785_v1, %v2042_v40  ;;  %2643 = vst.msk [vmem:[%s5523_s5 + $0x28] sm:$0xff] %vm2637_vm2, %v2042_v40  ;;  %v2089_v39 = vmul.f32 %v4945_v31, %v4945_v31 }
 0x265   :  { %v2121_v4 = vsel %vm1963_vm1, %v2089_v39, 0.0  ;;  %v2090_v34 = vmul.f32 %v4953_v54, %v4953_v54 }
 0x266   :  { %2122 = vadd.xlane.f32.xlu0 %v2121_v4  ;;  %v1984_v59 = vpop.xlane.xlu0 %1983 }
 0x267   :  { %v2043_v56 = vmul.f32 0.020408163, %v1984_v59  ;;  %v2124_v58 = vsel %vm1963_vm1, %v2090_v34, 0.0 }
 0x268   :  { %v1987_v1 = vpop.xlane.xlu1 %1986  ;;  %2125 = vadd.xlane.f32.xlu1 %v2124_v58 }
 0x269   :  { %v4966_v2 = vsub.f32 %v4792_v43, %v2043_v56  ;;  %2644 = vst.msk [vmem:[%s5523_s5 + $0x30] sm:$0xff] %vm2637_vm2, %v2043_v56  ;;  %v2044_v28 = vmul.f32 0.020408163, %v1987_v1 }
 0x26b   :  { %v4973_v14 = vsub.f32 %v4795_v22, %v2044_v28  ;;  %2645 = vst.msk [vmem:[%s5523_s5 + $0x38] sm:$0xff] %vm2637_vm2, %v2044_v28  ;;  %v2091_v12 = vmul.f32 %v4966_v2, %v4966_v2 }
 0x26d   :  { %v2127_v43 = vsel %vm1963_vm1, %v2091_v12, 0.0  ;;  %v2092_v18 = vmul.f32 %v4973_v14, %v4973_v14 }
 0x26e   :  { %2128 = vadd.xlane.f32.xlu0 %v2127_v43  ;;  %v1990_v44 = vpop.xlane.xlu0 %1989 }
 0x26f   :  { %v2045_v29 = vmul.f32 0.020408163, %v1990_v44  ;;  %v2130_v25 = vsel %vm1963_vm1, %v2092_v18, 0.0 }
 0x270   :  { %v1993_v22 = vpop.xlane.xlu1 %1992  ;;  %2131 = vadd.xlane.f32.xlu1 %v2130_v25 }
 0x271   :  { %v4986_v6 = vsub.f32 %v4802_v5, %v2045_v29  ;;  %2646 = vst.msk [vmem:[%s5523_s5 + $0x40] sm:$0xff] %vm2637_vm2, %v2045_v29  ;;  %v2046_v38 = vmul.f32 0.020408163, %v1993_v22 }
 0x273   :  { %v4993_v33 = vsub.f32 %v4805_v46, %v2046_v38  ;;  %2647 = vst.msk [vmem:[%s5523_s5 + $0x48] sm:$0xff] %vm2637_vm2, %v2046_v38  ;;  %v2093_v45 = vmul.f32 %v4986_v6, %v4986_v6 }
 0x275   :  { %v2133_v5 = vsel %vm1963_vm1, %v2093_v45, 0.0  ;;  %v2094_v9 = vmul.f32 %v4993_v33, %v4993_v33 }
 0x276   :  { %2134 = vadd.xlane.f32.xlu0 %v2133_v5  ;;  %v1996_v15 = vpop.xlane.xlu0 %1995 }
 0x277   :  { %v2047_v37 = vmul.f32 0.020408163, %v1996_v15  ;;  %v2136_v13 = vsel %vm1963_vm1, %v2094_v9, 0.0 }
 0x278   :  { %v1999_v46 = vpop.xlane.xlu1 %1998  ;;  %2137 = vadd.xlane.f32.xlu1 %v2136_v13 }
 0x279   :  { %v5006_v42 = vsub.f32 %v4812_v30, %v2047_v37  ;;  %2648 = vst.msk [vmem:[%s5523_s5 + $0x50] sm:$0xff] %vm2637_vm2, %v2047_v37  ;;  %v2048_v20 = vmul.f32 0.020408163, %v1999_v46 }
 0x27b   :  { %v5013_v23 = vsub.f32 %v4815_v0, %v2048_v20  ;;  %2649 = vst.msk [vmem:[%s5523_s5 + $0x58] sm:$0xff] %vm2637_vm2, %v2048_v20  ;;  %v2095_v53 = vmul.f32 %v5006_v42, %v5006_v42 }
 0x27d   :  { %v2139_v30 = vsel %vm1963_vm1, %v2095_v53, 0.0  ;;  %v2096_v50 = vmul.f32 %v5013_v23, %v5013_v23 }
 0x27e   :  { %2140 = vadd.xlane.f32.xlu0 %v2139_v30  ;;  %v2002_v63 = vpop.xlane.xlu0 %2001 }
 0x27f   :  { %v2049_v40 = vmul.f32 0.020408163, %v2002_v63  ;;  %v2142_v57 = vsel %vm1963_vm1, %v2096_v50, 0.0 }
 0x280   :  { %v2005_v0 = vpop.xlane.xlu1 %2004  ;;  %2143 = vadd.xlane.f32.xlu1 %v2142_v57 }
 0x281   :  { %v5026_v39 = vsub.f32 %v4822_v51, %v2049_v40  ;;  %2650 = vst.msk [vmem:[%s5523_s5 + $0x60] sm:$0xff] %vm2637_vm2, %v2049_v40  ;;  %v2050_v4 = vmul.f32 0.020408163, %v2005_v0 }
 0x283   :  { %v5033_v34 = vsub.f32 %v4825_v17, %v2050_v4  ;;  %2651 = vst.msk [vmem:[%s5523_s5 + $0x68] sm:$0xff] %vm2637_vm2, %v2050_v4  ;;  %v2097_v59 = vmul.f32 %v5026_v39, %v5026_v39 }
 0x285   :  { %v2145_v51 = vsel %vm1963_vm1, %v2097_v59, 0.0  ;;  %v2098_v56 = vmul.f32 %v5033_v34, %v5033_v34 }
 0x286   :  { %2146 = vadd.xlane.f32.xlu0 %v2145_v51  ;;  %v2008_v58 = vpop.xlane.xlu0 %2007 }
 0x287   :  { %v2051_v1 = vmul.f32 0.020408163, %v2008_v58  ;;  %v2148_v28 = vsel %vm1963_vm1, %v2098_v56, 0.0 }
 0x288   :  { %v2011_v17 = vpop.xlane.xlu1 %2010  ;;  %2149 = vadd.xlane.f32.xlu1 %v2148_v28 }
 0x289   :  { %v5046_v12 = vsub.f32 %v4832_v41, %v2051_v1  ;;  %2652 = vst.msk [vmem:[%s5523_s5 + $0x70] sm:$0xff] %vm2637_vm2, %v2051_v1  ;;  %v2052_v43 = vmul.f32 0.020408163, %v2011_v17 }
 0x28b   :  { %v5053_v18 = vsub.f32 %v4835_v10, %v2052_v43  ;;  %2653 = vst.msk [vmem:[%s5523_s5 + $0x78] sm:$0xff] %vm2637_vm2, %v2052_v43  ;;  %v2099_v44 = vmul.f32 %v5046_v12, %v5046_v12 }
 0x28d   :  { %v2151_v41 = vsel %vm1963_vm1, %v2099_v44, 0.0  ;;  %v2100_v29 = vmul.f32 %v5053_v18, %v5053_v18 }
 0x28e   :  { %2152 = vadd.xlane.f32.xlu0 %v2151_v41  ;;  %v2014_v25 = vpop.xlane.xlu0 %2013 }
 0x28f   :  { %v2053_v22 = vmul.f32 0.020408163, %v2014_v25  ;;  %v2154_v38 = vsel %vm1963_vm1, %v2100_v29, 0.0  ;;  %v2457_v29 = vld [vmem:[%s5522_s3 + $0x60] sm:$0xff] }
 0x290   :  { %v2017_v10 = vpop.xlane.xlu1 %2016  ;;  %2155 = vadd.xlane.f32.xlu1 %v2154_v38  ;;  %v2461_v25 = vld [vmem:[%s5522_s3 + $0x80] sm:$0xff]  ;;  %v2463_v38 = vld [vmem:[%s5522_s3 + $0x90] sm:$0xff] }
 0x291   :  { %v5066_v45 = vsub.f32 %v4842_v62, %v2053_v22  ;;  %2654 = vst.msk [vmem:[%s5523_s5 + $0x80] sm:$0xff] %vm2637_vm2, %v2053_v22  ;;  %v2054_v5 = vmul.f32 0.020408163, %v2017_v10  ;;  %v2456_v22 = vld [vmem:[%s5522_s3 + $0x58] sm:$0xff]  ;;  %v2458_v10 = vld [vmem:[%s5522_s3 + $0x68] sm:$0xff] }
 0x293   :  { %v5073_v9 = vsub.f32 %v4845_v26, %v2054_v5  ;;  %2655 = vst.msk [vmem:[%s5523_s5 + $0x88] sm:$0xff] %vm2637_vm2, %v2054_v5  ;;  %v2101_v15 = vmul.f32 %v5066_v45, %v5066_v45  ;;  %v2465_v5 = vld [vmem:[%s5522_s3 + $0xa0] sm:$0xff] }
 0x295   :  { %v2157_v62 = vsel %vm1963_vm1, %v2101_v15, 0.0  ;;  %v2102_v37 = vmul.f32 %v5073_v9, %v5073_v9  ;;  %v2460_v15 = vld [vmem:[%s5522_s3 + $0x78] sm:$0xff] }
 0x296   :  { %2158 = vadd.xlane.f32.xlu0 %v2157_v62  ;;  %v2020_v13 = vpop.xlane.xlu0 %2019  ;;  %v2462_v62 = vld [vmem:[%s5522_s3 + $0x88] sm:$0xff] }
 0x297   :  { %v2055_v46 = vmul.f32 0.020408163, %v2020_v13  ;;  %v2160_v20 = vsel %vm1963_vm1, %v2102_v37, 0.0  ;;  %v2464_v13 = vld [vmem:[%s5522_s3 + $0x98] sm:$0xff] }
 0x298   :  { %v2023_v26 = vpop.xlane.xlu1 %2022  ;;  %2161 = vadd.xlane.f32.xlu1 %v2160_v20  ;;  %v2466_v20 = vld [vmem:[%s5522_s3 + $0xa8] sm:$0xff] }
 0x299   :  { %v5086_v53 = vsub.f32 %v4852_v24, %v2055_v46  ;;  %2656 = vst.msk [vmem:[%s5523_s5 + $0x90] sm:$0xff] %vm2637_vm2, %v2055_v46  ;;  %v2056_v30 = vmul.f32 0.020408163, %v2023_v26 }
 0x29b   :  { %v5093_v50 = vsub.f32 %v4855_v27, %v2056_v30  ;;  %2657 = vst.msk [vmem:[%s5523_s5 + $0x98] sm:$0xff] %vm2637_vm2, %v2056_v30  ;;  %v2103_v63 = vmul.f32 %v5086_v53, %v5086_v53 }
 0x29d   :  { %v2163_v24 = vsel %vm1963_vm1, %v2103_v63, 0.0  ;;  %v2104_v40 = vmul.f32 %v5093_v50, %v5093_v50 }
 0x29e   :  { %2164 = vadd.xlane.f32.xlu0 %v2163_v24  ;;  %v2026_v57 = vpop.xlane.xlu0 %2025 }
 0x29f   :  { %v2057_v0 = vmul.f32 0.020408163, %v2026_v57  ;;  %v2166_v4 = vsel %vm1963_vm1, %v2104_v40, 0.0 }
 0x2a0   :  { %v2029_v27 = vpop.xlane.xlu1 %2028  ;;  %2167 = vadd.xlane.f32.xlu1 %v2166_v4 }
 0x2a1   :  { %v5106_v59 = vsub.f32 %v4862_v48, %v2057_v0  ;;  %2658 = vst.msk [vmem:[%s5523_s5 + $0xa0] sm:$0xff] %vm2637_vm2, %v2057_v0  ;;  %v2058_v51 = vmul.f32 0.020408163, %v2029_v27 }
 0x2a3   :  { %v5113_v56 = vsub.f32 %v4865_v49, %v2058_v51  ;;  %2659 = vst.msk [vmem:[%s5523_s5 + $0xa8] sm:$0xff] %vm2637_vm2, %v2058_v51  ;;  %v2105_v58 = vmul.f32 %v5106_v59, %v5106_v59 }
 0x2a4   :  { %v5162_v37 = vpop.permute.xlu1 %2521 }
 0x2a5   :  { %v2169_v48 = vsel %vm1963_vm1, %v2105_v58, 0.0  ;;  %v2106_v1 = vmul.f32 %v5113_v56, %v5113_v56 }
 0x2a6   :  { %2170 = vadd.xlane.f32.xlu0 %v2169_v48  ;;  %v2032_v28 = vpop.xlane.xlu0 %2031 }
 0x2a7   :  { %v2059_v17 = vmul.f32 0.020408163, %v2032_v28  ;;  %v2172_v43 = vsel %vm1963_vm1, %v2106_v1, 0.0 }
 0x2a8   :  { %2173 = vadd.xlane.f32.xlu1 %v2172_v43  ;;  %v2205_v43 = vld [vmem:[%s5525_s2] sm:$0xff] }
 0x2a9   :  { %v5126_v49 = vsub.f32 %v4872_v3, %v2059_v17  ;;  %2660 = vst.msk [vmem:[%s5523_s5 + $0xb0] sm:$0xff] %vm2637_vm2, %v2059_v17  ;;  %v2459_v3 = vld [vmem:[%s5522_s3 + $0x70] sm:$0xff] }
 0x2ab   :  { %v2107_v44 = vmul.f32 %v5126_v49, %v5126_v49 }
 0x2ad   :  { %v2175_v41 = vsel %vm1963_vm1, %v2107_v44, 0.0 }
 0x2ae   :  { %2176 = vadd.xlane.f32.xlu0 %v2175_v41  ;;  %v5174_v30 = vpop.permute.xlu0 %2516 }
 0x2b9   :  { %2531 = vperm.xlu1 %3295, %v2457_v29  }
 0x2bd   :  { %2541 = vperm.xlu1 %3295, %v2459_v3  }
 0x2c1   :  { %2551 = vperm.xlu1 %3295, %v2461_v25  }
 0x2c4   :  { %2526 = vperm.xlu0 %3296, %v2456_v22  }
 0x2c5   :  { %2561 = vperm.xlu1 %3295, %v2463_v38  }
 0x2c8   :  { %2536 = vperm.xlu0 %3296, %v2458_v10  }
 0x2c9   :  { %2571 = vperm.xlu1 %3295, %v2465_v5  }
 0x2cc   :  { %2546 = vperm.xlu0 %3296, %v2460_v15   ;;  %v2206_v15 = vld [vmem:[%s5525_s2 + $0x8] sm:$0xff] }
 0x2d0   :  { %2556 = vperm.xlu0 %3296, %v2462_v62  }
 0x2d4   :  { %2566 = vperm.xlu0 %3296, %v2464_v13  }
 0x2d5   :  { %v2035_v46 = vpop.xlane.xlu1 %2034 }
 0x2d6   :  { %v2060_v26 = vmul.f32 0.020408163, %v2035_v46 }
 0x2d8   :  { %2661 = vst.msk [vmem:[%s5523_s5 + $0xb8] sm:$0xff] %vm2637_vm2, %v2060_v26  ;;  %2576 = vperm.xlu0 %3296, %v2466_v20   ;;  %v5177_v24 = vsub.f32 %v4875_v7, %v2060_v26 }
 0x2da   :  { %v2108_v27 = vmul.f32 %v5177_v24, %v5177_v24 }
 0x2dc   :  { %v2178_v48 = vsel %vm1963_vm1, %v2108_v27, 0.0 }
 0x2e3   :  { %v2111_v63 = vpop.xlane.xlu0 %2110 }
 0x2e4   :  { %v2181_v40 = vmul.f32 0.020408163, %v2111_v63 }
 0x2e6   :  { %v2229_v57 = vadd.f32 1e-05, %v2181_v40  ;;  %2662 = vst.msk [vmem:[%s5524_s6] sm:$0xff] %vm2637_vm2, %v2181_v40  ;;  %v2207_v40 = vld [vmem:[%s5525_s2 + $0x10] sm:$0xff] }
 0x2e7   :  { %v2114_v0 = vpop.xlane.xlu1 %2113 }
 0x2e8   :  { %3513 = vrsqrt.f32 %v2229_v57  ;;  %v2182_v4 = vmul.f32 0.020408163, %v2114_v0 }
 0x2ea   :  { %2663 = vst.msk [vmem:[%s5524_s6 + $0x8] sm:$0xff] %vm2637_vm2, %v2182_v4  ;;  %v2230_v7 = vadd.f32 1e-05, %v2182_v4 }
 0x2eb   :  { %v2117_v51 = vpop.xlane.xlu0 %2116 }
 0x2ec   :  { %v2183_v58 = vmul.f32 0.020408163, %v2117_v51  ;;  %3515 = vrsqrt.f32 %v2230_v7  ;;  %v2208_v7 = vld [vmem:[%s5525_s2 + $0x18] sm:$0xff] }
 0x2ed   :  { %2179 = vadd.xlane.f32.xlu1 %v2178_v48 }
 0x2ee   :  { %2664 = vst.msk [vmem:[%s5524_s6 + $0x10] sm:$0xff] %vm2637_vm2, %v2183_v58  ;;  %v2231_v1 = vadd.f32 1e-05, %v2183_v58 }
 0x2ef   :  { %v2120_v28 = vpop.xlane.xlu1 %2119 }
 0x2f0   :  { %v2184_v17 = vmul.f32 0.020408163, %v2120_v28  ;;  %3517 = vrsqrt.f32 %v2231_v1 }
 0x2f2   :  { %v3514_v44 = vpop.eup %3513  ;;  %2665 = vst.msk [vmem:[%s5524_s6 + $0x18] sm:$0xff] %vm2637_vm2, %v2184_v17  ;;  %v2232_v41 = vadd.f32 1e-05, %v2184_v17 }
 0x2f3   :  { %v2123_v29 = vpop.xlane.xlu0 %2122  ;;  %v2277_v3 = vmul.f32 %v3514_v44, %v2205_v43  ;;  %v2209_v43 = vld [vmem:[%s5525_s2 + $0x20] sm:$0xff] }
 0x2f4   :  { %v2185_v25 = vmul.f32 0.020408163, %v2123_v29  ;;  %3519 = vrsqrt.f32 %v2232_v41 }
 0x2f5   :  { %v2126_v22 = vpop.xlane.xlu1 %2125  ;;  %2303 = vperm.xlu0 %3296, %v2277_v3  }
 0x2f6   :  { %2666 = vst.msk [vmem:[%s5524_s6 + $0x20] sm:$0xff] %vm2637_vm2, %v2185_v25  ;;  %v2186_v38 = vmul.f32 0.020408163, %v2126_v22  ;;  %v2233_v10 = vadd.f32 1e-05, %v2185_v25  ;;  %v3516_v5 = vpop.eup %3515  ;;  %v2210_v22 = vld [vmem:[%s5525_s2 + $0x28] sm:$0xff] }
 0x2f7   :  { %v2278_v20 = vmul.f32 %v3516_v5, %v2206_v15 }
 0x2f8   :  { %2667 = vst.msk [vmem:[%s5524_s6 + $0x28] sm:$0xff] %vm2637_vm2, %v2186_v38  ;;  %3521 = vrsqrt.f32 %v2233_v10  ;;  %v2234_v62 = vadd.f32 1e-05, %v2186_v38 }
 0x2fa   :  { %v3518_v26 = vpop.eup %3517  ;;  %3523 = vrsqrt.f32 %v2234_v62 }
 0x2fb   :  { %v2129_v13 = vpop.xlane.xlu0 %2128  ;;  %v2279_v4 = vmul.f32 %v3518_v26, %v2207_v40 }
 0x2fc   :  { %v2187_v46 = vmul.f32 0.020408163, %v2129_v13  ;;  %v2211_v13 = vld [vmem:[%s5525_s2 + $0x30] sm:$0xff] }
 0x2fd   :  { %v2132_v63 = vpop.xlane.xlu1 %2131 }
 0x2fe   :  { %2668 = vst.msk [vmem:[%s5524_s6 + $0x30] sm:$0xff] %vm2637_vm2, %v2187_v46  ;;  %v2188_v57 = vmul.f32 0.020408163, %v2132_v63  ;;  %2308 = vperm.xlu1 %3295, %v2278_v20   ;;  %v2235_v0 = vadd.f32 1e-05, %v2187_v46  ;;  %v3520_v27 = vpop.eup %3519 }
 0x2ff   :  { %v2280_v1 = vmul.f32 %v3520_v27, %v2208_v7 }
 0x300   :  { %2669 = vst.msk [vmem:[%s5524_s6 + $0x38] sm:$0xff] %vm2637_vm2, %v2188_v57  ;;  %3525 = vrsqrt.f32 %v2235_v0  ;;  %v2236_v51 = vadd.f32 1e-05, %v2188_v57  ;;  %v2212_v57 = vld [vmem:[%s5525_s2 + $0x38] sm:$0xff]  ;;  %v2214_v0 = vld [vmem:[%s5525_s2 + $0x48] sm:$0xff] }
 0x302   :  { %2313 = vperm.xlu1 %3295, %v2279_v4   ;;  %v3522_v28 = vpop.eup %3521  ;;  %3527 = vrsqrt.f32 %v2236_v51 }
 0x303   :  { %v2135_v58 = vpop.xlane.xlu0 %2134  ;;  %v2281_v3 = vmul.f32 %v3522_v28, %v2209_v43  ;;  %v2213_v28 = vld [vmem:[%s5525_s2 + $0x40] sm:$0xff] }
 0x304   :  { %v2189_v48 = vmul.f32 0.020408163, %v2135_v58  ;;  %v3524_v25 = vpop.eup %3523 }
 0x305   :  { %v2138_v17 = vpop.xlane.xlu1 %2137  ;;  %v2282_v5 = vmul.f32 %v3524_v25, %v2210_v22  ;;  %v2216_v25 = vld [vmem:[%s5525_s2 + $0x58] sm:$0xff] }
 0x306   :  { %2670 = vst.msk [vmem:[%s5524_s6 + $0x40] sm:$0xff] %vm2637_vm2, %v2189_v48  ;;  %v2190_v44 = vmul.f32 0.020408163, %v2138_v17  ;;  %2318 = vperm.xlu1 %3295, %v2280_v1   ;;  %v2237_v41 = vadd.f32 1e-05, %v2189_v48 }
 0x308   :  { %v2238_v29 = vadd.f32 1e-05, %v2190_v44  ;;  %2671 = vst.msk [vmem:[%s5524_s6 + $0x48] sm:$0xff] %vm2637_vm2, %v2190_v44 }
 0x30a   :  { %3529 = vrsqrt.f32 %v2238_v29  ;;  %2323 = vperm.xlu1 %3295, %v2281_v3   ;;  %v3526_v15 = vpop.eup %3525  ;;  %v2215_v29 = vld [vmem:[%s5525_s2 + $0x50] sm:$0xff] }
 0x30b   :  { %3531 = vrsqrt.f32 %v2237_v41  ;;  %v2141_v38 = vpop.xlane.xlu0 %2140  ;;  %v2283_v63 = vmul.f32 %v3526_v15, %v2211_v13 }
 0x30c   :  { %v2191_v10 = vmul.f32 0.020408163, %v2141_v38  ;;  %v3528_v40 = vpop.eup %3527 }
 0x30d   :  { %v2144_v62 = vpop.xlane.xlu1 %2143  ;;  %v2284_v51 = vmul.f32 %v3528_v40, %v2212_v57  ;;  %v2218_v40 = vld [vmem:[%s5525_s2 + $0x68] sm:$0xff] }
 0x30e   :  { %v2239_v46 = vadd.f32 1e-05, %v2191_v10  ;;  %2672 = vst.msk [vmem:[%s5524_s6 + $0x50] sm:$0xff] %vm2637_vm2, %v2191_v10  ;;  %v2192_v20 = vmul.f32 0.020408163, %v2144_v62  ;;  %2328 = vperm.xlu1 %3295, %v2282_v5  }
 0x310   :  { %3533 = vrsqrt.f32 %v2239_v46  ;;  %v2240_v26 = vadd.f32 1e-05, %v2192_v20  ;;  %2673 = vst.msk [vmem:[%s5524_s6 + $0x58] sm:$0xff] %vm2637_vm2, %v2192_v20 }
 0x312   :  { %3535 = vrsqrt.f32 %v2240_v26  ;;  %2333 = vperm.xlu1 %3295, %v2283_v63   ;;  %v2217_v26 = vld [vmem:[%s5525_s2 + $0x60] sm:$0xff] }
 0x313   :  { %v2147_v4 = vpop.xlane.xlu0 %2146 }
 0x314   :  { %v3530_v27 = vpop.eup %3529  ;;  %v2193_v7 = vmul.f32 0.020408163, %v2147_v4 }
 0x315   :  { %v3532_v58 = vpop.eup %3531  ;;  %v2150_v48 = vpop.xlane.xlu1 %2149  ;;  %v2286_v1 = vmul.f32 %v3530_v27, %v2214_v0 }
 0x316   :  { %v2241_v17 = vadd.f32 1e-05, %v2193_v7  ;;  %2674 = vst.msk [vmem:[%s5524_s6 + $0x60] sm:$0xff] %vm2637_vm2, %v2193_v7  ;;  %v2194_v43 = vmul.f32 0.020408163, %v2150_v48  ;;  %2338 = vperm.xlu1 %3295, %v2284_v51   ;;  %v2285_v41 = vmul.f32 %v3532_v58, %v2213_v28  ;;  %v2219_v28 = vld [vmem:[%s5525_s2 + $0x70] sm:$0xff] }
 0x317   :  { %2348 = vperm.xlu0 %3296, %v2286_v1  }
 0x318   :  { %3537 = vrsqrt.f32 %v2241_v17  ;;  %v2242_v44 = vadd.f32 1e-05, %v2194_v43  ;;  %2675 = vst.msk [vmem:[%s5524_s6 + $0x68] sm:$0xff] %vm2637_vm2, %v2194_v43  ;;  %v2220_v43 = vld [vmem:[%s5525_s2 + $0x78] sm:$0xff] }
 0x31a   :  { %v3534_v3 = vpop.eup %3533  ;;  %3539 = vrsqrt.f32 %v2242_v44  ;;  %2343 = vperm.xlu1 %3295, %v2285_v41  }
 0x31b   :  { %v2153_v22 = vpop.xlane.xlu0 %2152  ;;  %v2287_v38 = vmul.f32 %v3534_v3, %v2215_v29 }
 0x31c   :  { %v3536_v10 = vpop.eup %3535  ;;  %v2195_v5 = vmul.f32 0.020408163, %v2153_v22 }
 0x31d   :  { %v2156_v15 = vpop.xlane.xlu1 %2155  ;;  %v2288_v62 = vmul.f32 %v3536_v10, %v2216_v25 }
 0x31e   :  { %v2243_v13 = vadd.f32 1e-05, %v2195_v5  ;;  %2676 = vst.msk [vmem:[%s5524_s6 + $0x70] sm:$0xff] %vm2637_vm2, %v2195_v5  ;;  %v2196_v46 = vmul.f32 0.020408163, %v2156_v15  ;;  %2353 = vperm.xlu1 %3295, %v2287_v38   ;;  %v2221_v15 = vld [vmem:[%s5525_s2 + $0x80] sm:$0xff] }
 0x31f   :  { %2358 = vperm.xlu0 %3296, %v2288_v62  }
 0x320   :  { %3541 = vrsqrt.f32 %v2243_v13  ;;  %v2244_v20 = vadd.f32 1e-05, %v2196_v46  ;;  %2677 = vst.msk [vmem:[%s5524_s6 + $0x78] sm:$0xff] %vm2637_vm2, %v2196_v46  ;;  %v2222_v13 = vld [vmem:[%s5525_s2 + $0x88] sm:$0xff] }
 0x322   :  { %v3538_v63 = vpop.eup %3537  ;;  %3543 = vrsqrt.f32 %v2244_v20 }
 0x323   :  { %v2159_v57 = vpop.xlane.xlu0 %2158  ;;  %v2289_v0 = vmul.f32 %v3538_v63, %v2217_v26 }
 0x324   :  { %v3540_v4 = vpop.eup %3539  ;;  %v2197_v27 = vmul.f32 0.020408163, %v2159_v57 }
 0x325   :  { %v2162_v7 = vpop.xlane.xlu1 %2161  ;;  %2363 = vperm.xlu1 %3295, %v2289_v0   ;;  %v2290_v51 = vmul.f32 %v3540_v4, %v2218_v40 }
 0x326   :  { %v2245_v58 = vadd.f32 1e-05, %v2197_v27  ;;  %2678 = vst.msk [vmem:[%s5524_s6 + $0x80] sm:$0xff] %vm2637_vm2, %v2197_v27  ;;  %v2198_v48 = vmul.f32 0.020408163, %v2162_v7  ;;  %v2223_v7 = vld [vmem:[%s5525_s2 + $0x90] sm:$0xff] }
 0x327   :  { %2368 = vperm.xlu0 %3296, %v2290_v51  }
 0x328   :  { %3545 = vrsqrt.f32 %v2245_v58  ;;  %v2246_v1 = vadd.f32 1e-05, %v2198_v48  ;;  %2679 = vst.msk [vmem:[%s5524_s6 + $0x88] sm:$0xff] %vm2637_vm2, %v2198_v48  ;;  %v2224_v58 = vld [vmem:[%s5525_s2 + $0x98] sm:$0xff] }
 0x32a   :  { %v3542_v17 = vpop.eup %3541  ;;  %3547 = vrsqrt.f32 %v2246_v1 }
 0x32b   :  { %v2165_v44 = vpop.xlane.xlu0 %2164  ;;  %v2291_v41 = vmul.f32 %v3542_v17, %v2219_v28 }
 0x32c   :  { %v3544_v29 = vpop.eup %3543  ;;  %v2199_v3 = vmul.f32 0.020408163, %v2165_v44 }
 0x32d   :  { %v2168_v25 = vpop.xlane.xlu1 %2167  ;;  %2373 = vperm.xlu1 %3295, %v2291_v41   ;;  %v2292_v22 = vmul.f32 %v3544_v29, %v2220_v43  ;;  %v2225_v41 = vld [vmem:[%s5525_s2 + $0xa0] sm:$0xff] }
 0x32e   :  { %v2247_v38 = vadd.f32 1e-05, %v2199_v3  ;;  %2680 = vst.msk [vmem:[%s5524_s6 + $0x90] sm:$0xff] %vm2637_vm2, %v2199_v3  ;;  %v2200_v10 = vmul.f32 0.020408163, %v2168_v25  ;;  %v2226_v3 = vld [vmem:[%s5525_s2 + $0xa8] sm:$0xff] }
 0x32f   :  { %2378 = vperm.xlu0 %3296, %v2292_v22  }
 0x330   :  { %3549 = vrsqrt.f32 %v2247_v38  ;;  %v2248_v5 = vadd.f32 1e-05, %v2200_v10  ;;  %2681 = vst.msk [vmem:[%s5524_s6 + $0x98] sm:$0xff] %vm2637_vm2, %v2200_v10  ;;  %v2227_v10 = vld [vmem:[%s5525_s2 + $0xb0] sm:$0xff] }
 0x332   :  { %v3546_v62 = vpop.eup %3545  ;;  %3551 = vrsqrt.f32 %v2248_v5 }
 0x333   :  { %v2171_v46 = vpop.xlane.xlu0 %2170  ;;  %v2293_v20 = vmul.f32 %v3546_v62, %v2221_v15  ;;  %v2467_v62 = vld [vmem:[%s5522_s3 + $0xb0] sm:$0xff] }
 0x334   :  { %v3548_v26 = vpop.eup %3547  ;;  %v2201_v63 = vmul.f32 0.020408163, %v2171_v46 }
 0x335   :  { %v2174_v40 = vpop.xlane.xlu1 %2173  ;;  %2383 = vperm.xlu1 %3295, %v2293_v20   ;;  %v2294_v57 = vmul.f32 %v3548_v26, %v2222_v13 }
 0x336   :  { %v2249_v0 = vadd.f32 1e-05, %v2201_v63  ;;  %2682 = vst.msk [vmem:[%s5524_s6 + $0xa0] sm:$0xff] %vm2637_vm2, %v2201_v63  ;;  %v2202_v4 = vmul.f32 0.020408163, %v2174_v40 }
 0x337   :  { %2388 = vperm.xlu0 %3296, %v2294_v57  }
 0x338   :  { %3553 = vrsqrt.f32 %v2249_v0  ;;  %v2250_v27 = vadd.f32 1e-05, %v2202_v4  ;;  %2683 = vst.msk [vmem:[%s5524_s6 + $0xa8] sm:$0xff] %vm2637_vm2, %v2202_v4 }
 0x339   :  { %v5350_v20 = vpop.permute.xlu1 %2531 }
 0x33a   :  { %v3550_v51 = vpop.eup %3549  ;;  %3555 = vrsqrt.f32 %v2250_v27 }
 0x33b   :  { %v2177_v48 = vpop.xlane.xlu0 %2176  ;;  %v2295_v1 = vmul.f32 %v3550_v51, %v2223_v7 }
 0x33c   :  { %v3552_v28 = vpop.eup %3551  ;;  %v2203_v17 = vmul.f32 0.020408163, %v2177_v48 }
 0x33d   :  { %2393 = vperm.xlu1 %3295, %v2295_v1   ;;  %v2296_v43 = vmul.f32 %v3552_v28, %v2224_v58  ;;  %v5354_v63 = vpop.permute.xlu1 %2541 }
 0x33e   :  { %v2251_v44 = vadd.f32 1e-05, %v2203_v17  ;;  %2684 = vst.msk [vmem:[%s5524_s6 + $0xb0] sm:$0xff] %vm2637_vm2, %v2203_v17 }
 0x33f   :  { %2398 = vperm.xlu0 %3296, %v2296_v43  }
 0x340   :  { %3557 = vrsqrt.f32 %v2251_v44 }
 0x341   :  { %v5358_v57 = vpop.permute.xlu1 %2551 }
 0x342   :  { %v3554_v29 = vpop.eup %3553 }
 0x343   :  { %v2297_v25 = vmul.f32 %v3554_v29, %v2225_v41  ;;  %v5346_v13 = vpop.permute.xlu0 %2526 }
 0x344   :  { %v3556_v22 = vpop.eup %3555 }
 0x345   :  { %2403 = vperm.xlu1 %3295, %v2297_v25   ;;  %v2298_v38 = vmul.f32 %v3556_v22, %v2226_v3  ;;  %v5362_v4 = vpop.permute.xlu1 %2561 }
 0x347   :  { %2408 = vperm.xlu0 %3296, %v2298_v38   ;;  %v5348_v46 = vpop.permute.xlu0 %2536 }
 0x349   :  { %v5367_v58 = vpop.permute.xlu1 %2571 }
 0x34a   :  { %v3558_v5 = vpop.eup %3557 }
 0x34b   :  { %v2299_v15 = vmul.f32 %v3558_v5, %v2227_v10  ;;  %v5352_v26 = vpop.permute.xlu0 %2546 }
 0x34d   :  { %2413 = vperm.xlu1 %3295, %v2299_v15  }
 0x34f   :  { %v5356_v40 = vpop.permute.xlu0 %2556 }
 0x351   :  { %2581 = vperm.xlu1 %3295, %v2467_v62  }
 0x353   :  { %v5360_v0 = vpop.permute.xlu0 %2566 }
 0x357   :  { %v5364_v27 = vpop.permute.xlu0 %2576 }
 0x374   :  { %v2304_v7 = vpop.permute.xlu0 %2303 }
 0x375   :  { %v2421_v51 = vmul.f32 %v2304_v7, %v4904_v60 }
 0x377   :  { %v2589_v48 = vadd.f32 %v4887_v11, %v2421_v51 }
 0x379   :  { %2613 = vst.msk [vmem:[%s5526_s4] sm:$0xff] %vm1963_vm1, %v2589_v48 }
 0x37a   :  { %v2180_v1 = vpop.xlane.xlu1 %2179 }
 0x37b   :  { %v2204_v28 = vmul.f32 0.020408163, %v2180_v1 }
 0x37d   :  { %v2252_v17 = vadd.f32 1e-05, %v2204_v28  ;;  %2685 = vst.msk [vmem:[%s5524_s6 + $0xb8] sm:$0xff] %vm2637_vm2, %v2204_v28 }
 0x37e   :  { %v2309_v43 = vpop.permute.xlu1 %2308 }
 0x37f   :  { %3559 = vrsqrt.f32 %v2252_v17  ;;  %v2422_v60 = vmul.f32 %v2309_v43, %v4915_v35 }
 0x381   :  { %v2590_v44 = vadd.f32 %v4885_v47, %v2422_v60  ;;  %v2228_v47 = vld [vmem:[%s5525_s2 + $0xb8] sm:$0xff] }
 0x382   :  { %v2314_v11 = vpop.permute.xlu1 %2313 }
 0x383   :  { %2614 = vst.msk [vmem:[%s5526_s4 + $0x8] sm:$0xff] %vm1963_vm1, %v2590_v44  ;;  %v2423_v41 = vmul.f32 %v2314_v11, %v4925_v36 }
 0x385   :  { %v2591_v29 = vadd.f32 %v4891_v8, %v2423_v41 }
 0x386   :  { %v2319_v3 = vpop.permute.xlu1 %2318 }
 0x387   :  { %2615 = vst.msk [vmem:[%s5526_s4 + $0x10] sm:$0xff] %vm1963_vm1, %v2591_v29  ;;  %v2424_v35 = vmul.f32 %v2319_v3, %v4935_v61  ;;  %v2468_v61 = vld [vmem:[%s5522_s3 + $0xb8] sm:$0xff] }
 0x389   :  { %v3560_v25 = vpop.eup %3559  ;;  %v2592_v22 = vadd.f32 %v4889_v21, %v2424_v35 }
 0x38a   :  { %v2324_v38 = vpop.permute.xlu1 %2323  ;;  %v2300_v10 = vmul.f32 %v3560_v25, %v2228_v47 }
 0x38b   :  { %2616 = vst.msk [vmem:[%s5526_s4 + $0x18] sm:$0xff] %vm1963_vm1, %v2592_v22  ;;  %v2425_v8 = vmul.f32 %v2324_v38, %v4945_v31 }
 0x38c   :  { %2418 = vperm.xlu0 %3296, %v2300_v10  }
 0x38d   :  { %v2593_v36 = vadd.f32 %v4895_v52, %v2425_v8 }
 0x38e   :  { %v2329_v5 = vpop.permute.xlu1 %2328 }
 0x38f   :  { %2617 = vst.msk [vmem:[%s5526_s4 + $0x20] sm:$0xff] %vm1963_vm1, %v2593_v36  ;;  %v2426_v21 = vmul.f32 %v2329_v5, %v4953_v54 }
 0x390   :  { %2586 = vperm.xlu0 %3296, %v2468_v61  }
 0x391   :  { %v2594_v15 = vadd.f32 %v4893_v19, %v2426_v21 }
 0x392   :  { %v2334_v62 = vpop.permute.xlu1 %2333 }
 0x393   :  { %2618 = vst.msk [vmem:[%s5526_s4 + $0x28] sm:$0xff] %vm1963_vm1, %v2594_v15  ;;  %v2427_v52 = vmul.f32 %v2334_v62, %v4966_v2 }
 0x395   :  { %v2595_v31 = vadd.f32 %v4901_v55, %v2427_v52 }
 0x396   :  { %v2339_v7 = vpop.permute.xlu1 %2338  ;;  %v2349_v51 = vpop.permute.xlu0 %2348 }
 0x397   :  { %2619 = vst.msk [vmem:[%s5526_s4 + $0x30] sm:$0xff] %vm1963_vm1, %v2595_v31  ;;  %v2428_v54 = vmul.f32 %v2339_v7, %v4973_v14  ;;  %v2430_v19 = vmul.f32 %v2349_v51, %v4993_v33 }
 0x399   :  { %v2596_v48 = vadd.f32 %v4899_v16, %v2428_v54  ;;  %v2598_v1 = vadd.f32 %v5174_v30, %v2430_v19 }
 0x39a   :  { %v2344_v28 = vpop.permute.xlu1 %2343 }
 0x39b   :  { %2620 = vst.msk [vmem:[%s5526_s4 + $0x38] sm:$0xff] %vm1963_vm1, %v2596_v48  ;;  %2622 = vst.msk [vmem:[%s5526_s4 + $0x48] sm:$0xff] %vm1963_vm1, %v2598_v1  ;;  %v2429_v55 = vmul.f32 %v2344_v28, %v4986_v6 }
 0x39d   :  { %v2597_v2 = vadd.f32 %v4910_v32, %v2429_v55 }
 0x39e   :  { %v2354_v14 = vpop.permute.xlu1 %2353  ;;  %v2359_v33 = vpop.permute.xlu0 %2358 }
 0x39f   :  { %2621 = vst.msk [vmem:[%s5526_s4 + $0x40] sm:$0xff] %vm1963_vm1, %v2597_v2  ;;  %v2431_v16 = vmul.f32 %v2354_v14, %v5006_v42  ;;  %v2432_v30 = vmul.f32 %v2359_v33, %v5013_v23 }
 0x3a1   :  { %v2599_v17 = vadd.f32 %v5162_v37, %v2431_v16  ;;  %v2600_v43 = vadd.f32 %v5346_v13, %v2432_v30 }
 0x3a3   :  { %2623 = vst.msk [vmem:[%s5526_s4 + $0x50] sm:$0xff] %vm1963_vm1, %v2599_v17  ;;  %2624 = vst.msk [vmem:[%s5526_s4 + $0x58] sm:$0xff] %vm1963_vm1, %v2600_v43 }
 0x3a4   :  { %v2364_v32 = vpop.permute.xlu1 %2363 }
 0x3a5   :  { %v2433_v6 = vmul.f32 %v2364_v32, %v5026_v39 }
 0x3a6   :  { %v2369_v42 = vpop.permute.xlu0 %2368 }
 0x3a7   :  { %v2601_v23 = vadd.f32 %v5350_v20, %v2433_v6  ;;  %v2434_v37 = vmul.f32 %v2369_v42, %v5033_v34 }
 0x3a9   :  { %2625 = vst.msk [vmem:[%s5526_s4 + $0x60] sm:$0xff] %vm1963_vm1, %v2601_v23  ;;  %v2602_v13 = vadd.f32 %v5348_v46, %v2434_v37 }
 0x3ab   :  { %2626 = vst.msk [vmem:[%s5526_s4 + $0x68] sm:$0xff] %vm1963_vm1, %v2602_v13 }
 0x3ac   :  { %v2374_v60 = vpop.permute.xlu1 %2373 }
 0x3ad   :  { %v2435_v39 = vmul.f32 %v2374_v60, %v5046_v12 }
 0x3ae   :  { %v2379_v44 = vpop.permute.xlu0 %2378 }
 0x3af   :  { %v2603_v20 = vadd.f32 %v5354_v63, %v2435_v39  ;;  %v2436_v34 = vmul.f32 %v2379_v44, %v5053_v18 }
 0x3b1   :  { %2627 = vst.msk [vmem:[%s5526_s4 + $0x70] sm:$0xff] %vm1963_vm1, %v2603_v20  ;;  %v2604_v46 = vadd.f32 %v5352_v26, %v2436_v34 }
 0x3b3   :  { %2628 = vst.msk [vmem:[%s5526_s4 + $0x78] sm:$0xff] %vm1963_vm1, %v2604_v46 }
 0x3b4   :  { %v2384_v11 = vpop.permute.xlu1 %2383 }
 0x3b5   :  { %v2437_v12 = vmul.f32 %v2384_v11, %v5066_v45 }
 0x3b6   :  { %v2389_v41 = vpop.permute.xlu0 %2388 }
 0x3b7   :  { %v2605_v63 = vadd.f32 %v5358_v57, %v2437_v12  ;;  %v2438_v18 = vmul.f32 %v2389_v41, %v5073_v9 }
 0x3b9   :  { %2629 = vst.msk [vmem:[%s5526_s4 + $0x80] sm:$0xff] %vm1963_vm1, %v2605_v63  ;;  %v2606_v26 = vadd.f32 %v5356_v40, %v2438_v18 }
 0x3bb   :  { %2630 = vst.msk [vmem:[%s5526_s4 + $0x88] sm:$0xff] %vm1963_vm1, %v2606_v26 }
 0x3bc   :  { %v2394_v29 = vpop.permute.xlu1 %2393 }
 0x3bd   :  { %v2439_v45 = vmul.f32 %v2394_v29, %v5086_v53 }
 0x3be   :  { %v2399_v3 = vpop.permute.xlu0 %2398 }
 0x3bf   :  { %v2607_v57 = vadd.f32 %v5362_v4, %v2439_v45  ;;  %v2440_v9 = vmul.f32 %v2399_v3, %v5093_v50 }
 0x3c1   :  { %2631 = vst.msk [vmem:[%s5526_s4 + $0x90] sm:$0xff] %vm1963_vm1, %v2607_v57  ;;  %v2608_v40 = vadd.f32 %v5360_v0, %v2440_v9 }
 0x3c3   :  { %2632 = vst.msk [vmem:[%s5526_s4 + $0x98] sm:$0xff] %vm1963_vm1, %v2608_v40 }
 0x3c4   :  { %v2404_v35 = vpop.permute.xlu1 %2403 }
 0x3c5   :  { %v2441_v53 = vmul.f32 %v2404_v35, %v5106_v59 }
 0x3c6   :  { %v2409_v47 = vpop.permute.xlu0 %2408 }
 0x3c7   :  { %v2609_v4 = vadd.f32 %v5367_v58, %v2441_v53  ;;  %v2442_v50 = vmul.f32 %v2409_v47, %v5113_v56 }
 0x3c9   :  { %2633 = vst.msk [vmem:[%s5526_s4 + $0xa0] sm:$0xff] %vm1963_vm1, %v2609_v4  ;;  %v2610_v0 = vadd.f32 %v5364_v27, %v2442_v50 }
 0x3cb   :  { %2634 = vst.msk [vmem:[%s5526_s4 + $0xa8] sm:$0xff] %vm1963_vm1, %v2610_v0 }
 0x3cc   :  { %v2414_v25 = vpop.permute.xlu1 %2413 }
 0x3cd   :  { %v2443_v59 = vmul.f32 %v2414_v25, %v5126_v49 }
 0x3d0   :  { %v2582_v22 = vpop.permute.xlu1 %2581 }
 0x3d1   :  { %v2611_v38 = vadd.f32 %v2582_v22, %v2443_v59 }
 0x3d3   :  { %2635 = vst.msk [vmem:[%s5526_s4 + $0xb0] sm:$0xff] %vm1963_vm1, %v2611_v38 }
 0x40b   :  { %v2419_v56 = vpop.permute.xlu0 %2418 }
 0x40c   :  { %v2444_v58 = vmul.f32 %v2419_v56, %v5177_v24 }
 0x40f   :  { %v2587_v10 = vpop.permute.xlu0 %2586 }
 0x410   :  { %v2612_v27 = vadd.f32 %v2587_v10, %v2444_v58 }
 0x412   :  { %2636 = vst.msk [vmem:[%s5526_s4 + $0xb8] sm:$0xff] %vm1963_vm1, %v2612_v27 }

</bundles_post_ra>
